<compile_context>
chip_gen: v5e
topology: v5e:2x2
jax: 0.10.0
libtpu: 0.0.40
codegen_flags: <defaults>
</compile_context>

<pallas_src>
import math

import jax
import jax.numpy as jnp
from jax.experimental import pallas as pl
from jax.experimental.pallas import tpu as pltpu


LANE = 128


def decoder_kernel(x_ref, w1_ref, b1_ref, w2_ref, b2_ref, w3_ref, b3_ref, out_ref):
    x = x_ref[...]  # [TILE_B, 2] f32

    # fc1 on the VPU: K=2 contraction is wasteful on the MXU.
    h1 = (x[:, 0:1] * w1_ref[0:1, :]
          + x[:, 1:2] * w1_ref[1:2, :]
          + b1_ref[...])
    h1 = jnp.maximum(h1, 0.0)

    # fc2 on the MXU (bf16 operands, f32 accumulate / epilogue).
    h2 = jnp.dot(h1.astype(jnp.bfloat16), w2_ref[...],
                 preferred_element_type=jnp.float32) + b2_ref[...]
    h2 = jnp.maximum(h2, 0.0)

    # fc3 on the MXU (bf16 operands, f32 accumulate / epilogue), lane-dense 896-wide output.
    logits = jnp.dot(h2.astype(jnp.bfloat16), w3_ref[...],
                     preferred_element_type=jnp.float32) + b3_ref[...]
    out_ref[...] = jax.nn.sigmoid(logits).astype(out_ref.dtype)


def prepare_decoder_params(params):
    """One-time prep: transpose to [in, out], cast MXU weights to bf16, and
    zero-pad fc3 output columns up to a multiple of 128 (784 -> 896)."""
    (w1, b1), (w2, b2), (w3, b3) = params["fc1"], params["fc2"], params["fc3"]
    out_f = w3.shape[0]
    out_pad = ((out_f + LANE - 1) // LANE) * LANE

    w3_t = jnp.zeros((w3.shape[1], out_pad), jnp.bfloat16)
    w3_t = w3_t.at[:, :out_f].set(w3.T.astype(jnp.bfloat16))
    b3_r = jnp.zeros((1, out_pad), jnp.float32).at[:, :out_f].set(b3)

    return {
        "w1": w1.T.astype(jnp.float32),          # [2, 20]   (VPU path, keep f32)
        "b1": b1[None, :].astype(jnp.float32),   # [1, 20]
        "w2": w2.T.astype(jnp.bfloat16),         # [20, 400]
        "b2": b2[None, :].astype(jnp.float32),   # [1, 400]
        "w3": w3_t,                              # [400, 896] bf16, zero-padded cols
        "b3": b3_r,                              # [1, 896]
        "out_features": out_f,
    }


def decoder_forward(x, prep, tile_b=256):
    """x: [B, 2] float32. prep: output of prepare_decoder_params. Returns [B, 784] f32."""
    B = x.shape[0]
    out_f = prep["out_features"]
    out_pad = prep["w3"].shape[1]

    # Batch tile: 256 for large batches (keeps the 256-wide MXU full on v6e/v7x);
    # for small batches just round B up to a multiple of 8 and use one grid step.
    if B >= tile_b:
        TILE_B = tile_b
    else:
        TILE_B = max(8, ((B + 7) // 8) * 8)
    B_pad = ((B + TILE_B - 1) // TILE_B) * TILE_B
    if B_pad != B:
        x = jnp.pad(x, ((0, B_pad - B), (0, 0)))

    grid = (B_pad // TILE_B,)

    w1, b1, w2, b2, w3, b3 = (prep["w1"], prep["b1"], prep["w2"],
                              prep["b2"], prep["w3"], prep["b3"])

    cost = pl.CostEstimate(
        flops=2 * B_pad * (2 * 20 + 20 * 400 + 400 * out_pad),
        transcendentals=B_pad * out_pad,
        bytes_accessed=(x.size * 4 + w1.size * 4 + b1.size * 4
                        + w2.size * 2 + b2.size * 4
                        + w3.size * 2 + b3.size * 4
                        + B_pad * out_pad * 4),
    )

    out = pl.pallas_call(
        decoder_kernel,
        out_shape=jax.ShapeDtypeStruct((B_pad, out_pad), jnp.float32),
        grid=grid,
        in_specs=[
            pl.BlockSpec((TILE_B, 2), lambda i: (i, 0)),          # x: tiled over batch
            pl.BlockSpec(w1.shape, lambda i: (0, 0)),             # weights/biases resident
            pl.BlockSpec(b1.shape, lambda i: (0, 0)),
            pl.BlockSpec(w2.shape, lambda i: (0, 0)),
            pl.BlockSpec(b2.shape, lambda i: (0, 0)),
            pl.BlockSpec(w3.shape, lambda i: (0, 0)),
            pl.BlockSpec(b3.shape, lambda i: (0, 0)),
        ],
        out_specs=pl.BlockSpec((TILE_B, out_pad), lambda i: (i, 0)),
        compiler_params=pltpu.CompilerParams(
            dimension_semantics=("parallel",),
        ),
        cost_estimate=cost,
    )(x, w1, b1, w2, b2, w3, b3)

    return out[:B, :out_f]


def init_linear(key, out_features, in_features):
    """Deterministic init mirroring PyTorch nn.Linear default."""
    kw, kb = jax.random.split(key)
    bound = 1.0 / math.sqrt(in_features)
    w = jax.random.uniform(kw, (out_features, in_features), jnp.float32, -bound, bound)
    b = jax.random.uniform(kb, (out_features,), jnp.float32, -bound, bound)
    return w, b


def reference_forward(x, params):
    (w1, b1), (w2, b2), (w3, b3) = params["fc1"], params["fc2"], params["fc3"]
    h1 = jax.nn.relu(x @ w1.T + b1)
    h2 = jax.nn.relu(h1 @ w2.T + b2)
    return jax.nn.sigmoid(h2 @ w3.T + b3)


if __name__ == "__main__":
    key = jax.random.PRNGKey(0)
    k_x, k1, k2, k3 = jax.random.split(key, 4)

    batch = 8
    x = jax.random.normal(k_x, (batch, 2), jnp.float32)

    params = {
        "fc1": init_linear(k1, 20, 2),
        "fc2": init_linear(k2, 400, 20),
        "fc3": init_linear(k3, 28 * 28, 400),
    }

    prep = prepare_decoder_params(params)  # one-time weight prep (transpose/cast/pad)

    out = decoder_forward(x, prep)
    out = jax.block_until_ready(out)

    ref = reference_forward(x, params)
    assert out.shape == (batch, 28 * 28), out.shape
    # bf16 MXU weights -> looser tolerance vs the f32 reference.
    max_err = float(jnp.max(jnp.abs(out - ref)))
    assert max_err < 3e-2, f"mismatch vs reference: max abs err {max_err}"

    print("KERNEL_OK")
</pallas_src>

<mosaic_0001>
module attributes {stable_mosaic.version = 11 : i64} {
  func.func @decoder_kernel(%arg0: i32, %arg1: memref<8x2xf32, #tpu.memory_space<vmem>>, %arg2: memref<2x20xf32, #tpu.memory_space<vmem>>, %arg3: memref<1x20xf32, #tpu.memory_space<vmem>>, %arg4: memref<20x400xbf16, #tpu.memory_space<vmem>>, %arg5: memref<1x400xf32, #tpu.memory_space<vmem>>, %arg6: memref<400x896xbf16, #tpu.memory_space<vmem>>, %arg7: memref<1x896xf32, #tpu.memory_space<vmem>>, %arg8: memref<8x896xf32, #tpu.memory_space<vmem>>) attributes {dimension_semantics = [#tpu.dimension_semantics<parallel>], iteration_bounds = array<i64: 1>, scalar_prefetch = 0 : i64, scratch_operands = 0 : i64, tpu.core_type = #tpu.core_type<tc>, window_params = [{transform_indices = @transform_0, window_bounds = array<i64: 8, 2>}, {pipeline_mode = #tpu.pipeline_mode<synchronous>, transform_indices = @transform_1, window_bounds = array<i64: 2, 20>}, {pipeline_mode = #tpu.pipeline_mode<synchronous>, transform_indices = @transform_2, window_bounds = array<i64: 1, 20>}, {pipeline_mode = #tpu.pipeline_mode<synchronous>, transform_indices = @transform_3, window_bounds = array<i64: 20, 400>}, {pipeline_mode = #tpu.pipeline_mode<synchronous>, transform_indices = @transform_4, window_bounds = array<i64: 1, 400>}, {pipeline_mode = #tpu.pipeline_mode<synchronous>, transform_indices = @transform_5, window_bounds = array<i64: 400, 896>}, {pipeline_mode = #tpu.pipeline_mode<synchronous>, transform_indices = @transform_6, window_bounds = array<i64: 1, 896>}, {transform_indices = @transform_7, window_bounds = array<i64: 8, 896>}]} {
    %c0 = arith.constant 0 : index
    %c0_0 = arith.constant 0 : index
    %0 = vector.load %arg1[%c0, %c0_0] : memref<8x2xf32, #tpu.memory_space<vmem>>, vector<8x2xf32>
    %1 = vector.extract_strided_slice %0 {offsets = [0, 0], sizes = [8, 1], strides = [1, 1]} : vector<8x2xf32> to vector<8x1xf32>
    %c0_1 = arith.constant 0 : index
    %c0_2 = arith.constant 0 : index
    %2 = vector.load %arg2[%c0_1, %c0_2] : memref<2x20xf32, #tpu.memory_space<vmem>>, vector<1x20xf32>
    %3 = vector.broadcast %1 : vector<8x1xf32> to vector<8x20xf32>
    %4 = vector.broadcast %2 : vector<1x20xf32> to vector<8x20xf32>
    %5 = arith.mulf %3, %4 : vector<8x20xf32>
    %6 = vector.extract_strided_slice %0 {offsets = [0, 1], sizes = [8, 1], strides = [1, 1]} : vector<8x2xf32> to vector<8x1xf32>
    %c1 = arith.constant 1 : index
    %c0_3 = arith.constant 0 : index
    %7 = vector.load %arg2[%c1, %c0_3] : memref<2x20xf32, #tpu.memory_space<vmem>>, vector<1x20xf32>
    %8 = vector.broadcast %6 : vector<8x1xf32> to vector<8x20xf32>
    %9 = vector.broadcast %7 : vector<1x20xf32> to vector<8x20xf32>
    %10 = arith.mulf %8, %9 : vector<8x20xf32>
    %11 = arith.addf %5, %10 : vector<8x20xf32>
    %c0_4 = arith.constant 0 : index
    %c0_5 = arith.constant 0 : index
    %12 = vector.load %arg3[%c0_4, %c0_5] : memref<1x20xf32, #tpu.memory_space<vmem>>, vector<1x20xf32>
    %13 = vector.broadcast %12 : vector<1x20xf32> to vector<8x20xf32>
    %14 = arith.addf %11, %13 : vector<8x20xf32>
    %cst = arith.constant 0.000000e+00 : f32
    %15 = vector.broadcast %cst : f32 to vector<8x20xf32>
    %16 = arith.maximumf %14, %15 : vector<8x20xf32>
    %17 = arith.truncf %16 : vector<8x20xf32> to vector<8x20xbf16>
    %c0_6 = arith.constant 0 : index
    %c0_7 = arith.constant 0 : index
    %18 = vector.load %arg4[%c0_6, %c0_7] : memref<20x400xbf16, #tpu.memory_space<vmem>>, vector<20x400xbf16>
    %cst_8 = arith.constant dense<0.000000e+00> : vector<8x400xf32>
    %19 = tpu.matmul %17, %18, %cst_8 {dimension_numbers = #tpu.dot_dimension_numbers<[1], [0], [0], [1], [0, 0, 1, 1], [], []>} : vector<8x20xbf16>, vector<20x400xbf16>, vector<8x400xf32> -> vector<8x400xf32>
    %c0_9 = arith.constant 0 : index
    %c0_10 = arith.constant 0 : index
    %20 = vector.load %arg5[%c0_9, %c0_10] : memref<1x400xf32, #tpu.memory_space<vmem>>, vector<1x400xf32>
    %21 = vector.broadcast %20 : vector<1x400xf32> to vector<8x400xf32>
    %22 = arith.addf %19, %21 : vector<8x400xf32>
    %cst_11 = arith.constant 0.000000e+00 : f32
    %23 = vector.broadcast %cst_11 : f32 to vector<8x400xf32>
    %24 = arith.maximumf %22, %23 : vector<8x400xf32>
    %25 = arith.truncf %24 : vector<8x400xf32> to vector<8x400xbf16>
    %c0_12 = arith.constant 0 : index
    %c0_13 = arith.constant 0 : index
    %26 = vector.load %arg6[%c0_12, %c0_13] : memref<400x896xbf16, #tpu.memory_space<vmem>>, vector<400x896xbf16>
    %cst_14 = arith.constant dense<0.000000e+00> : vector<8x896xf32>
    %27 = tpu.matmul %25, %26, %cst_14 {dimension_numbers = #tpu.dot_dimension_numbers<[1], [0], [0], [1], [0, 0, 1, 1], [], []>} : vector<8x400xbf16>, vector<400x896xbf16>, vector<8x896xf32> -> vector<8x896xf32>
    %c0_15 = arith.constant 0 : index
    %c0_16 = arith.constant 0 : index
    %28 = vector.load %arg7[%c0_15, %c0_16] : memref<1x896xf32, #tpu.memory_space<vmem>>, vector<1x896xf32>
    %29 = vector.broadcast %28 : vector<1x896xf32> to vector<8x896xf32>
    %30 = arith.addf %27, %29 : vector<8x896xf32>
    %31 = arith.negf %30 : vector<8x896xf32>
    %32 = math.exp %31 : vector<8x896xf32>
    %cst_17 = arith.constant 1.000000e+00 : f32
    %33 = vector.broadcast %cst_17 : f32 to vector<8x896xf32>
    %34 = arith.addf %33, %32 : vector<8x896xf32>
    %35 = arith.divf %33, %34 : vector<8x896xf32>
    %c0_18 = arith.constant 0 : index
    %c0_19 = arith.constant 0 : index
    %36 = vector.load %arg8[%c0_18, %c0_19] : memref<8x896xf32, #tpu.memory_space<vmem>>, vector<8x896xf32>
    tpu.vector_store %arg8[%c0_18, %c0_19], %35 {strides = array<i32>} : memref<8x896xf32, #tpu.memory_space<vmem>>, vector<8x896xf32>,
    return
  }
  func.func @transform_0(%arg0: i32) -> (i32, i32) {
    %c0_i32 = arith.constant 0 : i32
    %c0_i32_0 = arith.constant 0 : i32
    return %arg0, %c0_i32 : i32, i32
  }
  func.func @transform_1(%arg0: i32) -> (i32, i32) {
    %c0_i32 = arith.constant 0 : i32
    %c0_i32_0 = arith.constant 0 : i32
    %c0_i32_1 = arith.constant 0 : i32
    return %c0_i32, %c0_i32_0 : i32, i32
  }
  func.func @transform_2(%arg0: i32) -> (i32, i32) {
    %c0_i32 = arith.constant 0 : i32
    %c0_i32_0 = arith.constant 0 : i32
    %c0_i32_1 = arith.constant 0 : i32
    return %c0_i32, %c0_i32_0 : i32, i32
  }
  func.func @transform_3(%arg0: i32) -> (i32, i32) {
    %c0_i32 = arith.constant 0 : i32
    %c0_i32_0 = arith.constant 0 : i32
    %c0_i32_1 = arith.constant 0 : i32
    return %c0_i32, %c0_i32_0 : i32, i32
  }
  func.func @transform_4(%arg0: i32) -> (i32, i32) {
    %c0_i32 = arith.constant 0 : i32
    %c0_i32_0 = arith.constant 0 : i32
    %c0_i32_1 = arith.constant 0 : i32
    return %c0_i32, %c0_i32_0 : i32, i32
  }
  func.func @transform_5(%arg0: i32) -> (i32, i32) {
    %c0_i32 = arith.constant 0 : i32
    %c0_i32_0 = arith.constant 0 : i32
    %c0_i32_1 = arith.constant 0 : i32
    return %c0_i32, %c0_i32_0 : i32, i32
  }
  func.func @transform_6(%arg0: i32) -> (i32, i32) {
    %c0_i32 = arith.constant 0 : i32
    %c0_i32_0 = arith.constant 0 : i32
    %c0_i32_1 = arith.constant 0 : i32
    return %c0_i32, %c0_i32_0 : i32, i32
  }
  func.func @transform_7(%arg0: i32) -> (i32, i32) {
    %c0_i32 = arith.constant 0 : i32
    %c0_i32_0 = arith.constant 0 : i32
    return %arg0, %c0_i32 : i32, i32
  }
}

</mosaic_0001>

<bundles_post_ra>
// kernel: tpu_custom_call.1
= control target key start
LH: loop header
LB: loop body
LE: loop exit
PB: predicated region body
PF: predicated region fallthrough
CT: control target
= control target key end

     0   :  { %12 = vsyncpa [#allocation3], 0  ;;  %s3053_s0 = inlined_call_operand.vmem [shape: f32[8,2], index: 0, kind: input, shape index: {}]   ;;  %s3054_s1 = inlined_call_operand.vmem [shape: f32[2,20], index: 1, kind: input, shape index: {}]   ;;  %s3055_s2 = inlined_call_operand.hbm [shape: f32[1,20], index: 2, kind: input, shape index: {}]   ;;  %s3056_s3 = inlined_call_operand.hbm [shape: bf16[20,400], index: 3, kind: input, shape index: {}]   ;;  %s3057_s4 = inlined_call_operand.vmem [shape: f32[1,400], index: 4, kind: input, shape index: {}]   ;;  %s3058_s5 = inlined_call_operand.hbm [shape: bf16[400,896], index: 5, kind: input, shape index: {}]   ;;  %s3059_s6 = inlined_call_operand.vmem [shape: f32[1,896], index: 6, kind: input, shape index: {}]   ;;  %s3060_s7 = inlined_call_operand.hbm [shape: f32[8,896], index: 7, kind: output, shape index: {}]  }
   0x1   :  { %13 = vsyncpa [#allocation6], 0  ;;  %s34_s26 = sshll.u32 %s3056_s3, 4  ;;  %s35_s26 = int_to_ptr.hbm [resolvable:$true] %s34_s26 }
   0x2   :  { %14 = vsyncpa [#allocation4], 0  ;;  %s2920_s27 = smov [#allocation5]   ;;  %s24_s8 = sshll.u32 %s3055_s2, 4  ;;  %s25_s8 = int_to_ptr.hbm [resolvable:$true] %s24_s8 }
   0x3   :  { %s36_s28 = sshll.u32 %s2920_s27, 4  ;;  %s2921_s9 = smov 256   ;;  %s37_s28 = int_to_ptr.vmem [resolvable:$true] %s36_s28 }
   0x4   :  { %s2922_s10 = smov 16   ;;  %s2923_s11 = smov [#allocation2]  }
   0x5   :  { %42 = dma.hbm_to_vmem [thread:$0]  %s35_s26, 768, %s37_s28, [#allocation6], %s2921_s9, %s2921_s9, %s2922_s10  }
   0x6   :  { %s26_s12 = sshll.u32 %s2923_s11, 4  ;;  %s49_s15 = sshll.u32 %s3058_s5, 4  ;;  %s27_s12 = int_to_ptr.vmem [resolvable:$true] %s26_s12  ;;  %s50_s15 = int_to_ptr.hbm [resolvable:$true] %s49_s15 }
   0x7   :  { %29 = dma.hbm_to_vmem [thread:$0]  %s25_s8, 16, %s27_s12, [#allocation3]  }
   0x8   :  { %s2924_s3 = smov [#allocation7]   ;;  %s2925_s17 = smov 448  }
   0x9   :  { %s51_s16 = sshll.u32 %s2924_s3, 4  ;;  %s2926_s18 = smov 28   ;;  %s52_s16 = int_to_ptr.vmem [resolvable:$true] %s51_s16 }
   0xa   :  { %57 = dma.hbm_to_vmem [thread:$0]  %s50_s15, 22400, %s52_s16, [#allocation6], %s2925_s17, %s2925_s17, %s2926_s18  }
   0xb   :  { %2914 = dma.done.wait [#allocation3], 16  }
   0xc   :  { %2915 = vsyncadd [#allocation3], 4294967280 }
   0xd   :  { %2916 = dma.done.wait [#allocation6], 23168  }
   0xe   :  { %2917 = vsyncadd [#allocation6], 4294944128  ;;  %v2927_v0 = vmov 0   ;;  %v73_v1 = vld [vmem:[%s3053_s0] sm:$0xff]  ;;  %v2928_v2 = vmov 1   ;;  %vm147_vm0 = vcmask 1041408  }
   0xf   :  { %2785 = vset.pattern.permute.xlu0 %v2927_v0  ;;  %v101_v3 = vld [vmem:[#allocation5 + $0x20] sm:$0x33]  ;;  %v102_v4 = vld [vmem:[#allocation5 + $0x28] sm:$0x33]  ;;  %v2598_v18 = vld [vmem:[#allocation5 + $0xc] sm:$0xf0] }
  0x10   :  { %77 = vperm.xlu0 %2785, %v73_v1   ;;  %v127_v5 = vunpack.c.l.b16 %v101_v3  ;;  %v128_v6 = vunpack.c.h.b16 %v101_v3  ;;  %v129_v7 = vunpack.c.l.b16 %v102_v4  ;;  %v130_v8 = vunpack.c.h.b16 %v102_v4  ;;  %v1864_v17 = vld [vmem:[#allocation5] sm:$0xf]  ;;  %v2596_v19 = vld [vmem:[#allocation5 + $0x4] sm:$0xf]  ;;  %v1866_v21 = vld [vmem:[#allocation5 + $0x10] sm:$0xf0] }
  0x11   :  { %v1865_v20 = vor.u32 %v2598_v18, %v1864_v17  ;;  %v1872_v22 = vld [vmem:[#allocation5 + $0x8] sm:$0xf]  ;;  %v2599_v23 = vld [vmem:[#allocation5 + $0x14] sm:$0xf0]  ;;  %v1869_v24 = vor.u32 %v2596_v19, %v1866_v21  ;;  %v2597_v26 = vld [vmem:[#allocation5 + $0xc] sm:$0xf] }
  0x12   :  { %v135_v9 = vpack.c.b16 %v127_v5, %v127_v5  ;;  %v136_v10 = vpack.c.b16 %v128_v6, %v128_v6  ;;  %v137_v11 = vpack.c.b16 %v129_v7, %v129_v7  ;;  %v138_v12 = vpack.c.b16 %v130_v8, %v130_v8  ;;  %v1874_v27 = vld [vmem:[#allocation5 + $0x18] sm:$0xf0]  ;;  %v2080_v29 = vld [vmem:[#allocation7 + $0x188] sm:$0xf]  ;;  %v2652_v30 = vld [vmem:[#allocation7 + $0x1a0] sm:$0xf0] }
  0x13   :  { %v1873_v25 = vor.u32 %v2599_v23, %v1872_v22  ;;  %v1877_v28 = vor.u32 %v2597_v26, %v1874_v27  ;;  %v2052_v31 = vld [vmem:[#allocation7 + $0x150] sm:$0xf]  ;;  %v2081_v32 = vor.u32 %v2652_v30, %v2080_v29  ;;  %v2645_v33 = vld [vmem:[#allocation7 + $0x168] sm:$0xf0]  ;;  %v2304_v34 = vld [vmem:[#allocation7 + $0x348] sm:$0xf] }
  0x14   :  { %v149_v13 = vsel %vm147_vm0, %v135_v9, 0  ;;  %v152_v14 = vsel %vm147_vm0, %v136_v10, 0  ;;  %v155_v15 = vsel %vm147_vm0, %v137_v11, 0  ;;  %v158_v16 = vsel %vm147_vm0, %v138_v12, 0  ;;  %v2024_v36 = vld [vmem:[#allocation7 + $0x118] sm:$0xf] }
  0x15   :  { %166 = vmatpush.bf16.msra.mxu0 %v149_v13  ;;  %179 = vmatpush.bf16.msra.mxu1 %v152_v14  ;;  %v2053_v35 = vor.u32 %v2645_v33, %v2052_v31  ;;  %v2708_v37 = vld [vmem:[#allocation7 + $0x360] sm:$0xf0]  ;;  %v2638_v38 = vld [vmem:[#allocation7 + $0x130] sm:$0xf0]  ;;  %v2276_v40 = vld [vmem:[#allocation7 + $0x310] sm:$0xf] }
  0x16   :  { %192 = vmatpush.bf16.msra.mxu2 %v155_v15  ;;  %205 = vmatpush.bf16.msra.mxu3 %v158_v16  ;;  %v2305_v39 = vor.u32 %v2708_v37, %v2304_v34  ;;  %v2701_v41 = vld [vmem:[#allocation7 + $0x328] sm:$0xf0]  ;;  %v2025_v43 = vor.u32 %v2638_v38, %v2024_v36  ;;  %v2248_v44 = vld [vmem:[#allocation7 + $0x2d8] sm:$0xf]  ;;  %v2694_v45 = vld [vmem:[#allocation7 + $0x2f0] sm:$0xf0] }
  0x17   :  { %v2277_v42 = vor.u32 %v2701_v41, %v2276_v40  ;;  %v1996_v46 = vld [vmem:[#allocation7 + $0xe0] sm:$0xf]  ;;  %v2631_v47 = vld [vmem:[#allocation7 + $0xf8] sm:$0xf0]  ;;  %v2528_v48 = vld [vmem:[#allocation7 + $0x508] sm:$0xf]  ;;  %v2249_v50 = vor.u32 %v2694_v45, %v2248_v44 }
  0x18   :  { %2786 = vset.pattern.permute.xlu0 %v2928_v2  ;;  %v2764_v49 = vld [vmem:[#allocation7 + $0x520] sm:$0xf0]  ;;  %v2220_v51 = vld [vmem:[#allocation7 + $0x2a0] sm:$0xf]  ;;  %v1997_v54 = vor.u32 %v2631_v47, %v1996_v46  ;;  %v2687_v55 = vld [vmem:[#allocation7 + $0x2b8] sm:$0xf0] }
  0x19   :  { %84 = vperm.xlu0 %2786, %v73_v1   ;;  %167 = vmatpush.bf16.msra.mxu0 %v1865_v20  ;;  %v2529_v52 = vor.u32 %v2764_v49, %v2528_v48  ;;  %v2556_v56 = vld [vmem:[#allocation7 + $0x540] sm:$0xf]  ;;  %v2771_v57 = vld [vmem:[#allocation7 + $0x558] sm:$0xf0]  ;;  %v1968_v58 = vld [vmem:[#allocation7 + $0xa8] sm:$0xf]  ;;  %v2221_v63 = vor.u32 %v2687_v55, %v2220_v51 }
  0x1a   :  { %180 = vmatpush.bf16.msra.mxu1 %v1869_v24  ;;  %193 = vmatpush.bf16.msra.mxu2 %v1873_v25  ;;  %v2624_v59 = vld [vmem:[#allocation7 + $0xc0] sm:$0xf0]  ;;  %v2557_v60 = vor.u32 %v2771_v57, %v2556_v56  ;;  %v2500_v61 = vld [vmem:[#allocation7 + $0x4d0] sm:$0xf]  ;;  %v2757_v62 = vld [vmem:[#allocation7 + $0x4e8] sm:$0xf0] }
  0x1b   :  { %206 = vmatpush.bf16.msra.mxu3 %v1877_v28  ;;  %v2192_v0 = vld [vmem:[#allocation7 + $0x268] sm:$0xf]  ;;  %v2501_v1 = vor.u32 %v2757_v62, %v2500_v61  ;;  %v1969_v2 = vor.u32 %v2624_v59, %v1968_v58  ;;  %v2680_v3 = vld [vmem:[#allocation7 + $0x280] sm:$0xf0]  ;;  %v2472_v4 = vld [vmem:[#allocation7 + $0x498] sm:$0xf] }
  0x1c   :  { %v2750_v5 = vld [vmem:[#allocation7 + $0x4b0] sm:$0xf0]  ;;  %v1940_v6 = vld [vmem:[#allocation7 + $0x70] sm:$0xf]  ;;  %v2617_v7 = vld [vmem:[#allocation7 + $0x88] sm:$0xf0]  ;;  %v2193_v11 = vor.u32 %v2680_v3, %v2192_v0 }
  0x1d   :  { %1340 = vmatpush.bf16.msrb.mxu0 %v2081_v32  ;;  %v2473_v8 = vor.u32 %v2750_v5, %v2472_v4  ;;  %v2787_v9 = vld [vmem:[%s3054_s1] ss:$0 sm:$0xff]  ;;  %v2788_v10 = vld [vmem:[%s3054_s1 + $0x1] ss:$0 sm:$0xff]  ;;  %v2444_v12 = vld [vmem:[#allocation7 + $0x460] sm:$0xf]  ;;  %v1941_v13 = vor.u32 %v2617_v7, %v1940_v6 }
  0x1e   :  { %1353 = vmatpush.bf16.msrb.mxu1 %v2305_v39  ;;  %1366 = vmatpush.bf16.msrb.mxu2 %v2529_v52  ;;  %v2164_v14 = vld [vmem:[#allocation7 + $0x230] sm:$0xf]  ;;  %v2673_v15 = vld [vmem:[#allocation7 + $0x248] sm:$0xf0]  ;;  %v2743_v16 = vld [vmem:[#allocation7 + $0x478] sm:$0xf0] }
  0x1f   :  { %1386 = vmatpush.bf16.msrb.mxu3 %v2557_v60  ;;  %v1912_v18 = vld [vmem:[#allocation7 + $0x38] sm:$0xf]  ;;  %v2610_v19 = vld [vmem:[#allocation7 + $0x50] sm:$0xf0]  ;;  %v2445_v20 = vor.u32 %v2743_v16, %v2444_v12  ;;  %v2789_v22 = vld [vmem:[#allocation2] ss:$0 sm:$0xff]  ;;  %v2165_v26 = vor.u32 %v2673_v15, %v2164_v14 }
  0x20   :  { %v2416_v24 = vld [vmem:[#allocation7 + $0x428] sm:$0xf]  ;;  %v2736_v25 = vld [vmem:[#allocation7 + $0x440] sm:$0xf0]  ;;  %v1913_v28 = vor.u32 %v2610_v19, %v1912_v18  ;;  %v2136_v29 = vld [vmem:[#allocation7 + $0x1f8] sm:$0xf] }
  0x21   :  { %1341 = vmatpush.bf16.msrb.mxu0 %v2053_v35  ;;  %v2666_v30 = vld [vmem:[#allocation7 + $0x210] sm:$0xf0]  ;;  %v2417_v31 = vor.u32 %v2736_v25, %v2416_v24  ;;  %v1884_v33 = vld [vmem:[#allocation7] sm:$0xf]  ;;  %v2603_v34 = vld [vmem:[#allocation7 + $0x18] sm:$0xf0] }
  0x22   :  { %1354 = vmatpush.bf16.msrb.mxu1 %v2277_v42  ;;  %1367 = vmatpush.bf16.msrb.mxu2 %v2501_v1  ;;  %v2705_v35 = vld [vmem:[#allocation7 + $0x34c] sm:$0xf]  ;;  %v2306_v36 = vld [vmem:[#allocation7 + $0x364] sm:$0xf0]  ;;  %v2137_v39 = vor.u32 %v2666_v30, %v2136_v29  ;;  %v2108_v41 = vld [vmem:[#allocation7 + $0x1c0] sm:$0xf]  ;;  %v1885_v46 = vor.u32 %v2603_v34, %v1884_v33 }
  0x23   :  { %v2649_v37 = vld [vmem:[#allocation7 + $0x18c] sm:$0xf]  ;;  %v2082_v38 = vld [vmem:[#allocation7 + $0x1a4] sm:$0xf0]  ;;  %v2659_v42 = vld [vmem:[#allocation7 + $0x1d8] sm:$0xf0]  ;;  %v2309_v48 = vor.u32 %v2705_v35, %v2306_v36 }
  0x24   :  { %vm143_vm1 = vcmask 162816   ;;  %v2530_v44 = vld [vmem:[#allocation7 + $0x524] sm:$0xf0]  ;;  %v2085_v47 = vor.u32 %v2649_v37, %v2082_v38  ;;  %v2642_v49 = vld [vmem:[#allocation7 + $0x154] sm:$0xf]  ;;  %v2109_v51 = vor.u32 %v2659_v42, %v2108_v41  ;;  %vm1336_vm2 = vcmask 130048  }
  0x25   :  { %1342 = vmatpush.bf16.msrb.mxu0 %v2025_v43  ;;  %v2761_v43 = vld [vmem:[#allocation7 + $0x50c] sm:$0xf]  ;;  %v2698_v52 = vld [vmem:[#allocation7 + $0x314] sm:$0xf]  ;;  %v2502_v56 = vld [vmem:[#allocation7 + $0x4ec] sm:$0xf0] }
  0x26   :  { %1355 = vmatpush.bf16.msrb.mxu1 %v2249_v50  ;;  %1368 = vmatpush.bf16.msrb.mxu2 %v2473_v8  ;;  %v2054_v50 = vld [vmem:[#allocation7 + $0x16c] sm:$0xf0]  ;;  %v2754_v55 = vld [vmem:[#allocation7 + $0x4d4] sm:$0xf]  ;;  %v2635_v59 = vld [vmem:[#allocation7 + $0x11c] sm:$0xf] }
  0x27   :  { %v2057_v57 = vor.u32 %v2642_v49, %v2054_v50  ;;  %v2026_v60 = vld [vmem:[#allocation7 + $0x134] sm:$0xf0]  ;;  %v2691_v61 = vld [vmem:[#allocation7 + $0x2dc] sm:$0xf]  ;;  %v2628_v4 = vld [vmem:[#allocation7 + $0xe4] sm:$0xf] }
  0x28   :  { %v2250_v62 = vld [vmem:[#allocation7 + $0x2f4] sm:$0xf0]  ;;  %v2747_v0 = vld [vmem:[#allocation7 + $0x49c] sm:$0xf]  ;;  %v1998_v5 = vld [vmem:[#allocation7 + $0xfc] sm:$0xf0] }
  0x29   :  { %1343 = vmatpush.bf16.msrb.mxu0 %v1997_v54  ;;  %v2533_v54 = vor.u32 %v2761_v43, %v2530_v44  ;;  %v2474_v1 = vld [vmem:[#allocation7 + $0x4b4] sm:$0xf0]  ;;  %v2253_v3 = vor.u32 %v2691_v61, %v2250_v62  ;;  %v2684_v6 = vld [vmem:[#allocation7 + $0x2a4] sm:$0xf]  ;;  %v2222_v7 = vld [vmem:[#allocation7 + $0x2bc] sm:$0xf0] }
  0x2a   :  { %1356 = vmatpush.bf16.msrb.mxu1 %v2221_v63  ;;  %1369 = vmatpush.bf16.msrb.mxu2 %v2445_v20  ;;  %v2505_v63 = vor.u32 %v2754_v55, %v2502_v56  ;;  %v2477_v8 = vor.u32 %v2747_v0, %v2474_v1  ;;  %v2194_v12 = vld [vmem:[#allocation7 + $0x284] sm:$0xf0]  ;;  %v2670_v14 = vld [vmem:[#allocation7 + $0x234] sm:$0xf]  ;;  %v2166_v15 = vld [vmem:[#allocation7 + $0x24c] sm:$0xf0] }
  0x2b   :  { %v2169_v16 = vor.u32 %v2670_v14, %v2166_v15  ;;  %v1970_v18 = vld [vmem:[#allocation7 + $0xc4] sm:$0xf0]  ;;  %v2388_v20 = vld [vmem:[#allocation7 + $0x3f0] sm:$0xf]  ;;  %v2138_v24 = vld [vmem:[#allocation7 + $0x214] sm:$0xf0] }
  0x2c   :  { %v2614_v29 = vld [vmem:[#allocation7 + $0x74] sm:$0xf]  ;;  %v1942_v30 = vld [vmem:[#allocation7 + $0x8c] sm:$0xf0]  ;;  %v2656_v35 = vld [vmem:[#allocation7 + $0x1c4] sm:$0xf] }
  0x2d   :  { %1344 = vmatpush.bf16.msrb.mxu0 %v1969_v2  ;;  %v2029_v2 = vor.u32 %v2635_v59, %v2026_v60  ;;  %v2722_v33 = vld [vmem:[#allocation7 + $0x3d0] sm:$0xf0]  ;;  %v2110_v36 = vld [vmem:[#allocation7 + $0x1dc] sm:$0xf0]  ;;  %v2733_v38 = vld [vmem:[#allocation7 + $0x42c] sm:$0xf] }
  0x2e   :  { %1357 = vmatpush.bf16.msrb.mxu1 %v2193_v11  ;;  %1370 = vmatpush.bf16.msrb.mxu2 %v2417_v31  ;;  %v2677_v11 = vld [vmem:[#allocation7 + $0x26c] sm:$0xf]  ;;  %v1945_v31 = vor.u32 %v2614_v29, %v1942_v30  ;;  %v2113_v37 = vor.u32 %v2656_v35, %v2110_v36  ;;  %v2607_v41 = vld [vmem:[#allocation7 + $0x3c] sm:$0xf]  ;;  %v1914_v42 = vld [vmem:[#allocation7 + $0x54] sm:$0xf0] }
  0x2f   :  { %v2332_v43 = vld [vmem:[#allocation7 + $0x380] sm:$0xf]  ;;  %v1917_v44 = vor.u32 %v2607_v41, %v1914_v42  ;;  %v2600_v50 = vld [vmem:[#allocation7 + $0x4] sm:$0xf]  ;;  %v2719_v56 = vld [vmem:[#allocation7 + $0x3bc] sm:$0xf] }
  0x30   :  { %v2712_v59 = vld [vmem:[#allocation7 + $0x384] sm:$0xf]  ;;  %v2334_v60 = vld [vmem:[#allocation7 + $0x39c] sm:$0xf0]  ;;  %v103_v62 = vld [vmem:[%s3057_s4] sm:$0xf] }
  0x31   :  { %1345 = vmatpush.bf16.msrb.mxu0 %v1941_v13  ;;  %v2197_v13 = vor.u32 %v2677_v11, %v2194_v12  ;;  %v2337_v61 = vor.u32 %v2712_v59, %v2334_v60  ;;  %v106_v0 = vperm.slane %v103_v62, 1  ;;  %v107_v11 = vperm.slane %v103_v62, 2  ;;  %v2709_v29 = vld [vmem:[#allocation7 + $0x368] sm:$0xf0]  ;;  %v2480_v30 = vld [vmem:[#allocation7 + $0x4a0] sm:$0xf] }
  0x32   :  { %1358 = vmatpush.bf16.msrb.mxu1 %v2165_v26  ;;  %v2740_v26 = vld [vmem:[#allocation7 + $0x464] sm:$0xf]  ;;  %v108_v12 = vperm.slane %v103_v62, 3  ;;  %v2060_v36 = vld [vmem:[#allocation7 + $0x158] sm:$0xf]  ;;  %s1851_s27 = sshll.u32 %s3060_s7, 4  ;;  %s1852_s27 = int_to_ptr.hbm [resolvable:$true] %s1851_s27 }
  0x33   :  { %v2284_v41 = vld [vmem:[#allocation7 + $0x318] sm:$0xf]  ;;  %v2702_v42 = vld [vmem:[#allocation7 + $0x330] sm:$0xf0]  ;;  %v2004_v60 = vld [vmem:[#allocation7 + $0xe8] sm:$0xf] }
  0x35   :  { %1346 = vmatpush.bf16.msrb.mxu0 %v1913_v28 }
  0x36   :  { %1359 = vmatpush.bf16.msrb.mxu1 %v2137_v39  ;;  %v2418_v39 = vld [vmem:[#allocation7 + $0x444] sm:$0xf0] }
  0x39   :  { %1347 = vmatpush.bf16.msrb.mxu0 %v1885_v46 }
  0x3a   :  { %1360 = vmatpush.bf16.msrb.mxu1 %v2109_v51  ;;  %v1886_v51 = vld [vmem:[#allocation7 + $0x1c] sm:$0xf0] }
  0x82   :  { %v78_v53 = vpop.permute.xlu0 %77 }
  0x83   :  { %v81_v21 = vmul.f32 %v2787_v9, %v78_v53  ;;  %v2278_v53 = vld [vmem:[#allocation7 + $0x32c] sm:$0xf0]  ;;  %v2001_v9 = vor.u32 %v2628_v4, %v1998_v5 }
  0x84   :  { %v2281_v58 = vor.u32 %v2698_v52, %v2278_v53  ;;  %v1889_v52 = vor.u32 %v2600_v50, %v1886_v51  ;;  %v2768_v53 = vld [vmem:[#allocation7 + $0x544] sm:$0xf]  ;;  %v2639_v51 = vld [vmem:[#allocation7 + $0x138] sm:$0xf0] }
  0x8b   :  { %v85_v17 = vpop.permute.xlu0 %84 }
  0x8c   :  { %v88_v23 = vmul.f32 %v2788_v10, %v85_v17  ;;  %v2225_v10 = vor.u32 %v2684_v6, %v2222_v7  ;;  %v2621_v17 = vld [vmem:[#allocation7 + $0xac] sm:$0xf]  ;;  %v2564_v7 = vld [vmem:[#allocation7 + $0x548] sm:$0xf] }
  0x8d   :  { %v1973_v19 = vor.u32 %v2621_v17, %v1970_v18  ;;  %v2765_v6 = vld [vmem:[#allocation7 + $0x528] sm:$0xf0]  ;;  %v2508_v17 = vld [vmem:[#allocation7 + $0x4d8] sm:$0xf]  ;;  %v2758_v18 = vld [vmem:[#allocation7 + $0x4f0] sm:$0xf0] }
  0x8e   :  { %v89_v27 = vadd.f32 %v88_v23, %v81_v21  ;;  %v2729_v21 = vld [vmem:[#allocation7 + $0x408] sm:$0xf0]  ;;  %v2663_v23 = vld [vmem:[#allocation7 + $0x1fc] sm:$0xf] }
  0x8f   :  { %v2141_v25 = vor.u32 %v2663_v23, %v2138_v24 }
  0x90   :  { %v94_v32 = vadd.f32 %v2789_v22, %v89_v27  ;;  %v2389_v22 = vor.u32 %v2729_v21, %v2388_v20  ;;  %v2446_v27 = vld [vmem:[#allocation7 + $0x47c] sm:$0xf0]  ;;  %v2088_v21 = vld [vmem:[#allocation7 + $0x190] sm:$0xf] }
  0x91   :  { %v2449_v28 = vor.u32 %v2740_v26, %v2446_v27  ;;  %v2509_v26 = vor.u32 %v2758_v18, %v2508_v17  ;;  %v2653_v27 = vld [vmem:[#allocation7 + $0x1a8] sm:$0xf0]  ;;  %v2723_v17 = vld [vmem:[#allocation7 + $0x3d8] sm:$0xf0]  ;;  %v2636_v18 = vld [vmem:[#allocation7 + $0x124] sm:$0xf] }
  0x92   :  { %v95_v40 = vmax.f32 %v94_v32, 0.0  ;;  %1371 = vmatpush.bf16.msrb.mxu2 %v2389_v22  ;;  %v2360_v32 = vld [vmem:[#allocation7 + $0x3b8] sm:$0xf] }
  0x93   :  { %v2361_v34 = vor.u32 %v2722_v33, %v2360_v32 }
  0x94   :  { %v96_v45 = vpack.c.bf16 %v95_v40, %v95_v40  ;;  %v2421_v40 = vor.u32 %v2733_v38, %v2418_v39 }
  0x96   :  { %1878 = vmatmul.msk.bf16.vlgmr.msra.gmra.mxu0 %vm143_vm1, %v96_v45  ;;  %1879 = vmatmul.msk.bf16.vlgmr.msra.gmra.mxu1 %vm143_vm1, %v96_v45 }
  0x97   :  { %1880 = vmatmul.msk.bf16.vlgmr.msra.gmra.mxu2 %vm143_vm1, %v96_v45  ;;  %1881 = vmatmul.msk.bf16.vlgmr.msra.gmra.mxu3 %vm143_vm1, %v96_v45  ;;  %v2715_v45 = vld [vmem:[#allocation7 + $0x398] sm:$0xf0] }
  0x98   :  { %1392 = vmatpush.bf16.msra.mxu3 %v2085_v47  ;;  %1405 = vmatpush.bf16.msra.mxu0 %v2309_v48  ;;  %v2333_v46 = vor.u32 %v2715_v45, %v2332_v43  ;;  %v2726_v47 = vld [vmem:[#allocation7 + $0x3f4] sm:$0xf]  ;;  %v2390_v48 = vld [vmem:[#allocation7 + $0x40c] sm:$0xf0]  ;;  %v2452_v43 = vld [vmem:[#allocation7 + $0x468] sm:$0xf] }
  0x99   :  { %1418 = vmatpush.bf16.msra.mxu1 %v2533_v54  ;;  %1372 = vmatpush.bf16.msrb.mxu2 %v2361_v34  ;;  %v2393_v49 = vor.u32 %v2726_v47, %v2390_v48  ;;  %v2558_v54 = vld [vmem:[#allocation7 + $0x55c] sm:$0xf0]  ;;  %v2089_v34 = vor.u32 %v2653_v27, %v2088_v21  ;;  %v2285_v48 = vor.u32 %v2702_v42, %v2284_v41  ;;  %v2667_v41 = vld [vmem:[#allocation7 + $0x218] sm:$0xf0] }
  0x9a   :  { %v2561_v55 = vor.u32 %v2768_v53, %v2558_v54  ;;  %v2695_v53 = vld [vmem:[#allocation7 + $0x2f8] sm:$0xf0]  ;;  %v2424_v54 = vld [vmem:[#allocation7 + $0x430] sm:$0xf] }
  0x9c   :  { %1393 = vmatpush.bf16.msra.mxu3 %v2057_v57  ;;  %1406 = vmatpush.bf16.msra.mxu0 %v2281_v58  ;;  %v2362_v57 = vld [vmem:[#allocation7 + $0x3d4] sm:$0xf0] }
  0x9d   :  { %1419 = vmatpush.bf16.msra.mxu1 %v2505_v63  ;;  %1373 = vmatpush.bf16.msrb.mxu2 %v2333_v46  ;;  %v2365_v58 = vor.u32 %v2719_v56, %v2362_v57  ;;  %v105_v63 = vperm.slane %v103_v62, 0  ;;  %v2650_v56 = vld [vmem:[#allocation7 + $0x194] sm:$0xf]  ;;  %v2090_v57 = vld [vmem:[#allocation7 + $0x1ac] sm:$0xf0] }
  0x9e   :  { %v2228_v62 = vld [vmem:[#allocation7 + $0x2a8] sm:$0xf] }
  0xa0   :  { %1394 = vmatpush.bf16.msra.mxu3 %v2029_v2  ;;  %1407 = vmatpush.bf16.msra.mxu0 %v2253_v3  ;;  %v2536_v3 = vld [vmem:[#allocation7 + $0x510] sm:$0xf] }
  0xa1   :  { %1420 = vmatpush.bf16.msra.mxu1 %v2477_v8  ;;  %1438 = vmatpush.bf16.msra.mxu2 %v2561_v55  ;;  %v2772_v8 = vld [vmem:[#allocation7 + $0x560] sm:$0xf0]  ;;  %v2737_v55 = vld [vmem:[#allocation7 + $0x448] sm:$0xf0] }
  0xa2   :  { %v2565_v14 = vor.u32 %v2772_v8, %v2564_v7  ;;  %v1976_v8 = vld [vmem:[#allocation7 + $0xb0] sm:$0xf] }
  0xa4   :  { %1395 = vmatpush.bf16.msra.mxu3 %v2001_v9  ;;  %1408 = vmatpush.bf16.msra.mxu0 %v2225_v10 }
  0xa5   :  { %1421 = vmatpush.bf16.msra.mxu1 %v2449_v28  ;;  %v2312_v28 = vld [vmem:[#allocation7 + $0x350] sm:$0xf] }
  0xa6   :  { %v2313_v35 = vor.u32 %v2709_v29, %v2312_v28  ;;  %v2340_v28 = vld [vmem:[#allocation7 + $0x388] sm:$0xf]  ;;  %v2716_v29 = vld [vmem:[#allocation7 + $0x3a0] sm:$0xf0] }
  0xa7   :  { %v2341_v42 = vor.u32 %v2716_v29, %v2340_v28  ;;  %v2633_v28 = vld [vmem:[#allocation7 + $0x108] sm:$0xf0]  ;;  %v2320_v29 = vld [vmem:[#allocation7 + $0x358] sm:$0xf] }
  0xa8   :  { %1409 = vmatpush.bf16.msra.mxu0 %v2197_v13  ;;  %1396 = vmatpush.bf16.msra.mxu3 %v1973_v19  ;;  %v2537_v13 = vor.u32 %v2765_v6, %v2536_v3  ;;  %v2730_v3 = vld [vmem:[#allocation7 + $0x410] sm:$0xf0] }
  0xa9   :  { %1422 = vmatpush.bf16.msra.mxu1 %v2421_v40  ;;  %v2646_v40 = vld [vmem:[#allocation7 + $0x170] sm:$0xf0] }
  0xaa   :  { %v2061_v47 = vor.u32 %v2646_v40, %v2060_v36  ;;  %v2566_v36 = vld [vmem:[#allocation7 + $0x564] sm:$0xf0]  ;;  %v2144_v40 = vld [vmem:[#allocation7 + $0x200] sm:$0xf] }
  0xac   :  { %1410 = vmatpush.bf16.msra.mxu0 %v2169_v16  ;;  %1397 = vmatpush.bf16.msra.mxu3 %v1945_v31  ;;  %v2751_v31 = vld [vmem:[#allocation7 + $0x4b8] sm:$0xf0] }
  0xad   :  { %1423 = vmatpush.bf16.msra.mxu1 %v2393_v49  ;;  %v2481_v39 = vor.u32 %v2751_v31, %v2480_v30  ;;  %v2032_v49 = vld [vmem:[#allocation7 + $0x120] sm:$0xf]  ;;  %v2629_v30 = vld [vmem:[#allocation7 + $0xec] sm:$0xf]  ;;  %v2006_v31 = vld [vmem:[#allocation7 + $0x104] sm:$0xf0] }
  0xb0   :  { %1411 = vmatpush.bf16.msra.mxu0 %v2141_v25  ;;  %1398 = vmatpush.bf16.msra.mxu3 %v1917_v44  ;;  %v2744_v44 = vld [vmem:[#allocation7 + $0x480] sm:$0xf0] }
  0xb1   :  { %1424 = vmatpush.bf16.msra.mxu1 %v2365_v58  ;;  %v2453_v50 = vor.u32 %v2744_v44, %v2452_v43  ;;  %v2033_v58 = vor.u32 %v2639_v51, %v2032_v49  ;;  %v2009_v43 = vor.u32 %v2629_v30, %v2006_v31  ;;  %v2622_v44 = vld [vmem:[#allocation7 + $0xb4] sm:$0xf]  ;;  %v1892_v51 = vld [vmem:[#allocation7 + $0x8] sm:$0xf] }
  0xb2   :  { %v2710_v30 = vld [vmem:[#allocation7 + $0x370] sm:$0xf0] }
  0xb4   :  { %1412 = vmatpush.bf16.msra.mxu0 %v2113_v37  ;;  %1399 = vmatpush.bf16.msra.mxu3 %v1889_v52  ;;  %v2256_v52 = vld [vmem:[#allocation7 + $0x2e0] sm:$0xf] }
  0xb5   :  { %1425 = vmatpush.bf16.msra.mxu1 %v2337_v61  ;;  %v2257_v59 = vor.u32 %v2695_v53, %v2256_v52  ;;  %v2632_v61 = vld [vmem:[#allocation7 + $0x100] sm:$0xf0]  ;;  %v2116_v53 = vld [vmem:[#allocation7 + $0x1c8] sm:$0xf] }
  0xb6   :  { %v2005_v6 = vor.u32 %v2632_v61, %v2004_v60  ;;  %v2604_v52 = vld [vmem:[#allocation7 + $0x20] sm:$0xf0]  ;;  %v2538_v60 = vld [vmem:[#allocation7 + $0x52c] sm:$0xf0]  ;;  %v2615_v61 = vld [vmem:[#allocation7 + $0x7c] sm:$0xf] }
 0x113   :  { %v169_v1 = vpop.f32.mrf.mxu0  ;;  %v182_v2 = vpop.f32.mrf.mxu1 }
 0x114   :  { %v170_v4 = vadd.f32 %v169_v1, %v105_v63  ;;  %v183_v5 = vadd.f32 %v182_v2, %v106_v0  ;;  %v2688_v63 = vld [vmem:[#allocation7 + $0x2c0] sm:$0xf0]  ;;  %v2425_v0 = vor.u32 %v2737_v55, %v2424_v54  ;;  %v2093_v1 = vor.u32 %v2650_v56, %v2090_v57  ;;  %v2396_v2 = vld [vmem:[#allocation7 + $0x3f8] sm:$0xf]  ;;  %v2706_v55 = vld [vmem:[#allocation7 + $0x354] sm:$0xf] }
 0x115   :  { %v2229_v7 = vor.u32 %v2688_v63, %v2228_v62  ;;  %v2660_v54 = vld [vmem:[#allocation7 + $0x1e0] sm:$0xf0]  ;;  %v2314_v56 = vld [vmem:[#allocation7 + $0x36c] sm:$0xf0]  ;;  %v1950_v62 = vld [vmem:[#allocation7 + $0x94] sm:$0xf0] }
 0x116   :  { %v212_v9 = vmax.f32 %v170_v4, 0.0  ;;  %v213_v10 = vmax.f32 %v183_v5, 0.0  ;;  %v2643_v4 = vld [vmem:[#allocation7 + $0x15c] sm:$0xf]  ;;  %v2062_v5 = vld [vmem:[#allocation7 + $0x174] sm:$0xf0] }
 0x117   :  { %v2068_v63 = vld [vmem:[#allocation7 + $0x160] sm:$0xf] }
 0x118   :  { %v2995_v15 = vpack.c.bf16 %v212_v9, %v212_v9  ;;  %v2997_v16 = vpack.c.bf16 %v213_v10, %v213_v10  ;;  %v2625_v9 = vld [vmem:[#allocation7 + $0xc8] sm:$0xf0]  ;;  %v2200_v10 = vld [vmem:[#allocation7 + $0x270] sm:$0xf] }
 0x11a   :  { %v195_v19 = vpop.f32.mrf.mxu2  ;;  %v208_v20 = vpop.f32.mrf.mxu3  ;;  %1348 = vmatmul.bf16.vlgmr.msrb.gmra.mxu0 %v2995_v15  ;;  %1361 = vmatmul.bf16.vlgmr.msrb.gmra.mxu1 %v2997_v16 }
 0x11b   :  { %v196_v22 = vadd.f32 %v195_v19, %v107_v11  ;;  %v209_v23 = vadd.f32 %v208_v20, %v108_v12  ;;  %1470 = vmatpush.bf16.msrb.mxu0 %v2537_v13  ;;  %v171_v24 = vpop.f32.mrf.mxu0  ;;  %v184_v25 = vpop.f32.mrf.mxu1  ;;  %1490 = vmatpush.bf16.msrb.mxu1 %v2565_v14  ;;  %v2681_v11 = vld [vmem:[#allocation7 + $0x288] sm:$0xf0]  ;;  %v2397_v12 = vor.u32 %v2730_v3, %v2396_v2  ;;  %v2368_v14 = vld [vmem:[#allocation7 + $0x3c0] sm:$0xf] }
 0x11c   :  { %v2065_v13 = vor.u32 %v2643_v4, %v2062_v5  ;;  %v2034_v19 = vld [vmem:[#allocation7 + $0x13c] sm:$0xf0]  ;;  %v1977_v20 = vor.u32 %v2625_v9, %v1976_v8  ;;  %v2201_v21 = vor.u32 %v2681_v11, %v2200_v10  ;;  %v2172_v24 = vld [vmem:[#allocation7 + $0x238] sm:$0xf]  ;;  %v2674_v25 = vld [vmem:[#allocation7 + $0x250] sm:$0xf0]  ;;  %v2117_v2 = vor.u32 %v2660_v54, %v2116_v53 }
 0x11d   :  { %v214_v32 = vmax.f32 %v196_v22, 0.0  ;;  %v215_v33 = vmax.f32 %v209_v23, 0.0  ;;  %v1948_v22 = vld [vmem:[#allocation7 + $0x78] sm:$0xf]  ;;  %v2618_v23 = vld [vmem:[#allocation7 + $0x90] sm:$0xf0]  ;;  %v2037_v27 = vor.u32 %v2636_v18, %v2034_v19  ;;  %v2317_v3 = vor.u32 %v2706_v55, %v2314_v56 }
 0x11e   :  { %v2699_v5 = vld [vmem:[#allocation7 + $0x31c] sm:$0xf]  ;;  %v2510_v10 = vld [vmem:[#allocation7 + $0x4f4] sm:$0xf0]  ;;  %v2608_v11 = vld [vmem:[#allocation7 + $0x44] sm:$0xf] }
 0x11f   :  { %v3001_v37 = vpack.c.bf16 %v214_v32, %v214_v32  ;;  %v3003_v38 = vpack.c.bf16 %v215_v33, %v215_v33  ;;  %1471 = vmatpush.bf16.msrb.mxu0 %v2509_v26  ;;  %v2369_v26 = vor.u32 %v2723_v17, %v2368_v14  ;;  %v1949_v32 = vor.u32 %v2618_v23, %v1948_v22  ;;  %v2755_v9 = vld [vmem:[#allocation7 + $0x4dc] sm:$0xf]  ;;  %v2640_v14 = vld [vmem:[#allocation7 + $0x140] sm:$0xf0]  ;;  %v1956_v54 = vld [vmem:[#allocation7 + $0x80] sm:$0xf] }
 0x120   :  { %v2173_v33 = vor.u32 %v2674_v25, %v2172_v24  ;;  %v2513_v18 = vor.u32 %v2755_v9, %v2510_v10  ;;  %v2692_v19 = vld [vmem:[#allocation7 + $0x2e4] sm:$0xf]  ;;  %v2482_v24 = vld [vmem:[#allocation7 + $0x4bc] sm:$0xf0]  ;;  %v2601_v25 = vld [vmem:[#allocation7 + $0xc] sm:$0xf] }
 0x121   :  { %1374 = vmatmul.bf16.vlgmr.msrb.gmra.mxu2 %v3001_v37  ;;  %2582 = vmatmul.msk.bf16.vlgmr.msrb.gmra.mxu3 %vm1336_vm2, %v3003_v38  ;;  %v2748_v23 = vld [vmem:[#allocation7 + $0x4a4] sm:$0xf]  ;;  %v2619_v55 = vld [vmem:[#allocation7 + $0x98] sm:$0xf0]  ;;  %v2264_v56 = vld [vmem:[#allocation7 + $0x2e8] sm:$0xf] }
 0x122   :  { %1444 = vmatpush.bf16.msrb.mxu2 %v2089_v34  ;;  %1457 = vmatpush.bf16.msrb.mxu3 %v2313_v35  ;;  %v197_v45 = vpop.f32.mrf.mxu2  ;;  %v210_v46 = vpop.f32.mrf.mxu3  ;;  %v1920_v34 = vld [vmem:[#allocation7 + $0x40] sm:$0xf]  ;;  %v2769_v35 = vld [vmem:[#allocation7 + $0x54c] sm:$0xf]  ;;  %v2720_v10 = vld [vmem:[#allocation7 + $0x3c4] sm:$0xf] }
 0x123   :  { %1472 = vmatpush.bf16.msrb.mxu0 %v2481_v39  ;;  %v2611_v39 = vld [vmem:[#allocation7 + $0x58] sm:$0xf0]  ;;  %v2569_v45 = vor.u32 %v2769_v35, %v2566_v36  ;;  %v1978_v46 = vld [vmem:[#allocation7 + $0xcc] sm:$0xf0]  ;;  %v2230_v36 = vld [vmem:[#allocation7 + $0x2c4] sm:$0xf0] }
 0x124   :  { %v1921_v49 = vor.u32 %v2611_v39, %v1920_v34  ;;  %v1981_v57 = vor.u32 %v2622_v44, %v1978_v46  ;;  %v2741_v39 = vld [vmem:[#allocation7 + $0x46c] sm:$0xf]  ;;  %v2292_v44 = vld [vmem:[#allocation7 + $0x320] sm:$0xf] }
 0x125   :  { %v2146_v9 = vld [vmem:[#allocation7 + $0x21c] sm:$0xf0] }
 0x126   :  { %1445 = vmatpush.bf16.msrb.mxu2 %v2061_v47  ;;  %1458 = vmatpush.bf16.msrb.mxu3 %v2285_v48  ;;  %v2096_v47 = vld [vmem:[#allocation7 + $0x198] sm:$0xf]  ;;  %v2654_v48 = vld [vmem:[#allocation7 + $0x1b0] sm:$0xf0] }
 0x127   :  { %1473 = vmatpush.bf16.msrb.mxu0 %v2453_v50  ;;  %v2145_v50 = vor.u32 %v2667_v41, %v2144_v40  ;;  %v2454_v40 = vld [vmem:[#allocation7 + $0x484] sm:$0xf0]  ;;  %v2321_v41 = vor.u32 %v2710_v30, %v2320_v29  ;;  %v2544_v30 = vld [vmem:[#allocation7 + $0x518] sm:$0xf] }
 0x12a   :  { %1446 = vmatpush.bf16.msrb.mxu2 %v2033_v58  ;;  %1459 = vmatpush.bf16.msrb.mxu3 %v2257_v59  ;;  %v2097_v58 = vor.u32 %v2654_v48, %v2096_v47  ;;  %v2762_v59 = vld [vmem:[#allocation7 + $0x514] sm:$0xf]  ;;  %v2457_v47 = vor.u32 %v2741_v39, %v2454_v40 }
 0x12b   :  { %1413 = vmatmul.bf16.vlgmr.msra.gmra.mxu0 %v2997_v16  ;;  %1426 = vmatmul.bf16.vlgmr.msra.gmra.mxu1 %v3001_v37  ;;  %v2541_v4 = vor.u32 %v2762_v59, %v2538_v60  ;;  %v2678_v48 = vld [vmem:[#allocation7 + $0x274] sm:$0xf]  ;;  %v2671_v60 = vld [vmem:[#allocation7 + $0x23c] sm:$0xf] }
 0x12c   :  { %1474 = vmatpush.bf16.msrb.mxu0 %v2425_v0  ;;  %1496 = vmatpush.bf16.msra.mxu1 %v2093_v1  ;;  %v2647_v0 = vld [vmem:[#allocation7 + $0x178] sm:$0xf0]  ;;  %v1893_v1 = vor.u32 %v2604_v52, %v1892_v51  ;;  %v2426_v51 = vld [vmem:[#allocation7 + $0x44c] sm:$0xf0] }
 0x12d   :  { %v2069_v8 = vor.u32 %v2647_v0, %v2068_v63  ;;  %v2398_v63 = vld [vmem:[#allocation7 + $0x414] sm:$0xf0]  ;;  %v1957_v0 = vor.u32 %v2619_v55, %v1956_v54  ;;  %v2266_v54 = vld [vmem:[#allocation7 + $0x304] sm:$0xf0] }
 0x12e   :  { %1447 = vmatpush.bf16.msrb.mxu2 %v2005_v6  ;;  %1460 = vmatpush.bf16.msrb.mxu3 %v2229_v7  ;;  %v2286_v6 = vld [vmem:[#allocation7 + $0x334] sm:$0xf0]  ;;  %v1953_v7 = vor.u32 %v2615_v61, %v1950_v62  ;;  %v2727_v62 = vld [vmem:[#allocation7 + $0x3fc] sm:$0xf] }
 0x12f   :  { %v2289_v17 = vor.u32 %v2699_v5, %v2286_v6  ;;  %v2174_v61 = vld [vmem:[#allocation7 + $0x254] sm:$0xf0]  ;;  %v2689_v5 = vld [vmem:[#allocation7 + $0x2c8] sm:$0xf0] }
 0x130   :  { %1475 = vmatpush.bf16.msrb.mxu0 %v2397_v12  ;;  %1497 = vmatpush.bf16.msra.mxu1 %v2065_v13  ;;  %v1922_v12 = vld [vmem:[#allocation7 + $0x5c] sm:$0xf0]  ;;  %v2040_v13 = vld [vmem:[#allocation7 + $0x128] sm:$0xf]  ;;  %v2177_v6 = vor.u32 %v2671_v60, %v2174_v61  ;;  %v2752_v61 = vld [vmem:[#allocation7 + $0x4c0] sm:$0xf0] }
 0x131   :  { %1400 = vmatmul.bf16.vlgmr.msra.gmra.mxu3 %v2995_v15  ;;  %2583 = vmatmul.msk.bf16.vlgmr.msra.gmra.mxu2 %vm1336_vm2, %v3003_v38  ;;  %v2041_v22 = vor.u32 %v2640_v14, %v2040_v13  ;;  %v1900_v14 = vld [vmem:[#allocation7 + $0x10] sm:$0xf]  ;;  %v2488_v60 = vld [vmem:[#allocation7 + $0x4a8] sm:$0xf] }
 0x132   :  { %1448 = vmatpush.bf16.msrb.mxu2 %v1977_v20  ;;  %1461 = vmatpush.bf16.msrb.mxu3 %v2201_v21  ;;  %v2258_v20 = vld [vmem:[#allocation7 + $0x2fc] sm:$0xf0]  ;;  %v1925_v21 = vor.u32 %v2608_v11, %v1922_v12 }
 0x133   :  { %v2261_v31 = vor.u32 %v2692_v19, %v2258_v20  ;;  %v2370_v11 = vld [vmem:[#allocation7 + $0x3dc] sm:$0xf0]  ;;  %v2682_v19 = vld [vmem:[#allocation7 + $0x290] sm:$0xf0] }
 0x134   :  { %1476 = vmatpush.bf16.msrb.mxu0 %v2369_v26  ;;  %1498 = vmatpush.bf16.msra.mxu1 %v2037_v27  ;;  %v1894_v26 = vld [vmem:[#allocation7 + $0x24] sm:$0xf0]  ;;  %v2012_v27 = vld [vmem:[#allocation7 + $0xf0] sm:$0xf] }
 0x135   :  { %v1897_v34 = vor.u32 %v2601_v25, %v1894_v26  ;;  %v2013_v35 = vor.u32 %v2633_v28, %v2012_v27  ;;  %v2118_v25 = vld [vmem:[#allocation7 + $0x1e4] sm:$0xf0]  ;;  %v2713_v26 = vld [vmem:[#allocation7 + $0x38c] sm:$0xf] }
 0x136   :  { %1449 = vmatpush.bf16.msrb.mxu2 %v1949_v32  ;;  %1462 = vmatpush.bf16.msrb.mxu3 %v2173_v33  ;;  %v2485_v32 = vor.u32 %v2748_v23, %v2482_v24  ;;  %v2685_v33 = vld [vmem:[#allocation7 + $0x2ac] sm:$0xf]  ;;  %v2322_v23 = vld [vmem:[#allocation7 + $0x374] sm:$0xf0]  ;;  %v2342_v27 = vld [vmem:[#allocation7 + $0x3a4] sm:$0xf0] }
 0x137   :  { %v2233_v46 = vor.u32 %v2685_v33, %v2230_v36  ;;  %v2657_v24 = vld [vmem:[#allocation7 + $0x1cc] sm:$0xf]  ;;  %v2345_v40 = vor.u32 %v2713_v26, %v2342_v27  ;;  %v2432_v26 = vld [vmem:[#allocation7 + $0x438] sm:$0xf]  ;;  %v2738_v27 = vld [vmem:[#allocation7 + $0x450] sm:$0xf0] }
 0x138   :  { %1477 = vmatpush.bf16.msrb.mxu0 %v2341_v42  ;;  %1499 = vmatpush.bf16.msra.mxu1 %v2009_v43  ;;  %v1984_v42 = vld [vmem:[#allocation7 + $0xb8] sm:$0xf]  ;;  %v2626_v43 = vld [vmem:[#allocation7 + $0xd0] sm:$0xf0]  ;;  %v2773_v36 = vld [vmem:[#allocation7 + $0x568] sm:$0xf0]  ;;  %v2121_v39 = vor.u32 %v2657_v24, %v2118_v25 }
 0x139   :  { %v1985_v52 = vor.u32 %v2626_v43, %v1984_v42  ;;  %v2294_v42 = vld [vmem:[#allocation7 + $0x33c] sm:$0xf0] }
 0x13a   :  { %1450 = vmatpush.bf16.msrb.mxu2 %v1921_v49  ;;  %1463 = vmatpush.bf16.msrb.mxu3 %v2145_v50  ;;  %v2202_v49 = vld [vmem:[#allocation7 + $0x28c] sm:$0xf0]  ;;  %v2734_v50 = vld [vmem:[#allocation7 + $0x434] sm:$0xf] }
 0x13b   :  { %1478 = vmatmul.bf16.vlgmr.msrb.gmra.mxu0 %v3001_v37  ;;  %2584 = vmatmul.msk.bf16.vlgmr.msrb.gmra.mxu1 %vm1336_vm2, %v3003_v38  ;;  %v2429_v59 = vor.u32 %v2734_v50, %v2426_v51  ;;  %v2152_v51 = vld [vmem:[#allocation7 + $0x208] sm:$0xf] }
 0x13c   :  { %1542 = vmatpush.bf16.msra.mxu0 %v2569_v45  ;;  %1500 = vmatpush.bf16.msra.mxu1 %v1981_v57  ;;  %v2703_v45 = vld [vmem:[#allocation7 + $0x338] sm:$0xf0]  ;;  %v2696_v57 = vld [vmem:[#allocation7 + $0x300] sm:$0xf0] }
 0x13d   :  { %v2293_v53 = vor.u32 %v2703_v45, %v2292_v44  ;;  %v2651_v44 = vld [vmem:[#allocation7 + $0x19c] sm:$0xf] }
 0x13e   :  { %1451 = vmatpush.bf16.msrb.mxu2 %v1893_v1  ;;  %1464 = vmatpush.bf16.msrb.mxu3 %v2117_v2  ;;  %v2265_v1 = vor.u32 %v2696_v57, %v2264_v56  ;;  %v1928_v2 = vld [vmem:[#allocation7 + $0x48] sm:$0xf]  ;;  %v2644_v57 = vld [vmem:[#allocation7 + $0x164] sm:$0xf] }
 0x140   :  { %1548 = vmatpush.bf16.msrb.mxu0 %v2097_v58  ;;  %1501 = vmatpush.bf16.msra.mxu1 %v1953_v7  ;;  %v2205_v58 = vor.u32 %v2678_v48, %v2202_v49  ;;  %v2401_v7 = vor.u32 %v2727_v62, %v2398_v63  ;;  %v2516_v48 = vld [vmem:[#allocation7 + $0x4e0] sm:$0xf]  ;;  %v2759_v49 = vld [vmem:[#allocation7 + $0x4f8] sm:$0xf0]  ;;  %v2124_v63 = vld [vmem:[#allocation7 + $0x1d0] sm:$0xf] }
 0x141   :  { %1452 = vmatmul.bf16.vlgmr.msrb.gmra.mxu2 %v2995_v15  ;;  %1465 = vmatmul.bf16.vlgmr.msrb.gmra.mxu3 %v2997_v16  ;;  %v2517_v56 = vor.u32 %v2759_v49, %v2516_v48  ;;  %v2616_v48 = vld [vmem:[#allocation7 + $0x84] sm:$0xf]  ;;  %v1958_v49 = vld [vmem:[#allocation7 + $0x9c] sm:$0xf0] }
 0x142   :  { %1509 = vmatpush.bf16.msra.mxu2 %v2317_v3  ;;  %1522 = vmatpush.bf16.msra.mxu3 %v2541_v4  ;;  %v2612_v3 = vld [vmem:[#allocation7 + $0x60] sm:$0xf0]  ;;  %v2236_v4 = vld [vmem:[#allocation7 + $0x2b0] sm:$0xf] }
 0x143   :  { %v1929_v12 = vor.u32 %v2612_v3, %v1928_v2  ;;  %v2237_v13 = vor.u32 %v2689_v5, %v2236_v4  ;;  %v2238_v2 = vld [vmem:[#allocation7 + $0x2cc] sm:$0xf0]  ;;  %v2763_v3 = vld [vmem:[#allocation7 + $0x51c] sm:$0xf]  ;;  %v2546_v4 = vld [vmem:[#allocation7 + $0x534] sm:$0xf0] }
 0x144   :  { %1549 = vmatpush.bf16.msrb.mxu0 %v2069_v8  ;;  %1502 = vmatpush.bf16.msra.mxu1 %v1925_v21  ;;  %v2664_v8 = vld [vmem:[#allocation7 + $0x204] sm:$0xf]  ;;  %v2373_v21 = vor.u32 %v2720_v10, %v2370_v11  ;;  %v2549_v11 = vor.u32 %v2763_v3, %v2546_v4  ;;  %v2717_v3 = vld [vmem:[#allocation7 + $0x3a8] sm:$0xf0] }
 0x145   :  { %v2149_v20 = vor.u32 %v2664_v8, %v2146_v9  ;;  %v2637_v8 = vld [vmem:[#allocation7 + $0x12c] sm:$0xf]  ;;  %v2042_v9 = vld [vmem:[#allocation7 + $0x144] sm:$0xf0]  ;;  %v2728_v4 = vld [vmem:[#allocation7 + $0x404] sm:$0xf] }
 0x146   :  { %1510 = vmatpush.bf16.msra.mxu2 %v2289_v17  ;;  %1523 = vmatpush.bf16.msra.mxu3 %v2513_v18  ;;  %v2605_v17 = vld [vmem:[#allocation7 + $0x28] sm:$0xf0]  ;;  %v2208_v18 = vld [vmem:[#allocation7 + $0x278] sm:$0xf] }
 0x147   :  { %v1901_v28 = vor.u32 %v2605_v17, %v1900_v14  ;;  %v2209_v29 = vor.u32 %v2682_v19, %v2208_v18  ;;  %v2679_v14 = vld [vmem:[#allocation7 + $0x27c] sm:$0xf]  ;;  %v2210_v17 = vld [vmem:[#allocation7 + $0x294] sm:$0xf0]  ;;  %v2756_v18 = vld [vmem:[#allocation7 + $0x4e4] sm:$0xf] }
 0x148   :  { %1550 = vmatpush.bf16.msrb.mxu0 %v2041_v22  ;;  %1503 = vmatpush.bf16.msra.mxu1 %v1897_v34  ;;  %v2707_v22 = vld [vmem:[#allocation7 + $0x35c] sm:$0xf]  ;;  %v2518_v19 = vld [vmem:[#allocation7 + $0x4fc] sm:$0xf0]  ;;  %v2213_v24 = vor.u32 %v2679_v14, %v2210_v17  ;;  %v1902_v14 = vld [vmem:[#allocation7 + $0x2c] sm:$0xf0] }
 0x149   :  { %v2325_v33 = vor.u32 %v2707_v22, %v2322_v23  ;;  %v2675_v34 = vld [vmem:[#allocation7 + $0x258] sm:$0xf0]  ;;  %v2630_v22 = vld [vmem:[#allocation7 + $0xf4] sm:$0xf]  ;;  %v2014_v23 = vld [vmem:[#allocation7 + $0x10c] sm:$0xf0]  ;;  %v2521_v25 = vor.u32 %v2756_v18, %v2518_v19 }
 0x14a   :  { %1511 = vmatpush.bf16.msra.mxu2 %v2261_v31  ;;  %1524 = vmatpush.bf16.msra.mxu3 %v2485_v32  ;;  %v2766_v31 = vld [vmem:[#allocation7 + $0x530] sm:$0xf0]  ;;  %v2180_v32 = vld [vmem:[#allocation7 + $0x240] sm:$0xf] }
 0x14b   :  { %1504 = vmatmul.bf16.vlgmr.msra.gmra.mxu1 %v2995_v15  ;;  %2585 = vmatmul.msk.bf16.vlgmr.msra.gmra.mxu0 %vm1336_vm2, %v3003_v38  ;;  %v2545_v43 = vor.u32 %v2766_v31, %v2544_v30  ;;  %v2181_v45 = vor.u32 %v2675_v34, %v2180_v32  ;;  %v2749_v30 = vld [vmem:[#allocation7 + $0x4ac] sm:$0xf]  ;;  %v2490_v31 = vld [vmem:[#allocation7 + $0x4c4] sm:$0xf0]  ;;  %v2017_v32 = vor.u32 %v2630_v22, %v2014_v23  ;;  %v2623_v34 = vld [vmem:[#allocation7 + $0xbc] sm:$0xf] }
 0x14c   :  { %1551 = vmatpush.bf16.msrb.mxu0 %v2013_v35  ;;  %1561 = vmatpush.bf16.msrb.mxu1 %v2321_v41  ;;  %v2572_v35 = vld [vmem:[#allocation7 + $0x550] sm:$0xf]  ;;  %v2700_v41 = vld [vmem:[#allocation7 + $0x324] sm:$0xf]  ;;  %v2104_v17 = vld [vmem:[#allocation7 + $0x1a0] sm:$0xf] }
 0x14d   :  { %v2297_v50 = vor.u32 %v2700_v41, %v2294_v42  ;;  %v2731_v41 = vld [vmem:[#allocation7 + $0x418] sm:$0xf0]  ;;  %v2665_v42 = vld [vmem:[#allocation7 + $0x20c] sm:$0xf] }
 0x14e   :  { %1512 = vmatpush.bf16.msra.mxu2 %v2233_v46  ;;  %1525 = vmatpush.bf16.msra.mxu3 %v2457_v47  ;;  %v2573_v46 = vor.u32 %v2773_v36, %v2572_v35  ;;  %v2098_v47 = vld [vmem:[#allocation7 + $0x1b4] sm:$0xf0]  ;;  %v2711_v22 = vld [vmem:[#allocation7 + $0x378] sm:$0xf0] }
 0x14f   :  { %v2101_v55 = vor.u32 %v2651_v44, %v2098_v47  ;;  %v1986_v35 = vld [vmem:[#allocation7 + $0xd4] sm:$0xf0]  ;;  %v2742_v44 = vld [vmem:[#allocation7 + $0x474] sm:$0xf] }
 0x150   :  { %1552 = vmatpush.bf16.msrb.mxu0 %v1985_v52  ;;  %1562 = vmatpush.bf16.msrb.mxu1 %v2293_v53  ;;  %v2668_v52 = vld [vmem:[#allocation7 + $0x220] sm:$0xf0]  ;;  %v2693_v53 = vld [vmem:[#allocation7 + $0x2ec] sm:$0xf] }
 0x151   :  { %v2269_v62 = vor.u32 %v2693_v53, %v2266_v54  ;;  %v2724_v53 = vld [vmem:[#allocation7 + $0x3e0] sm:$0xf0]  ;;  %v2658_v54 = vld [vmem:[#allocation7 + $0x1d4] sm:$0xf] }
 0x152   :  { %1513 = vmatpush.bf16.msra.mxu2 %v2205_v58  ;;  %1526 = vmatpush.bf16.msra.mxu3 %v2429_v59  ;;  %v2153_v58 = vor.u32 %v2668_v52, %v2152_v51  ;;  %v2070_v59 = vld [vmem:[#allocation7 + $0x17c] sm:$0xf0]  ;;  %v2376_v52 = vld [vmem:[#allocation7 + $0x3c8] sm:$0xf] }
 0x153   :  { %v2073_v5 = vor.u32 %v2644_v57, %v2070_v59  ;;  %v2434_v57 = vld [vmem:[#allocation7 + $0x454] sm:$0xf0]  ;;  %v2552_v59 = vld [vmem:[#allocation7 + $0x520] sm:$0xf] }
 0x154   :  { %1553 = vmatpush.bf16.msrb.mxu0 %v1957_v0  ;;  %1563 = vmatpush.bf16.msrb.mxu1 %v2265_v1  ;;  %v2661_v0 = vld [vmem:[#allocation7 + $0x1e8] sm:$0xf0]  ;;  %v2686_v1 = vld [vmem:[#allocation7 + $0x2b4] sm:$0xf] }
 0x155   :  { %v2241_v10 = vor.u32 %v2686_v1, %v2238_v2  ;;  %v2348_v2 = vld [vmem:[#allocation7 + $0x390] sm:$0xf] }
 0x156   :  { %1514 = vmatpush.bf16.msra.mxu2 %v2177_v6  ;;  %1527 = vmatpush.bf16.msra.mxu3 %v2401_v7  ;;  %v2489_v6 = vor.u32 %v2752_v61, %v2488_v60  ;;  %v2125_v7 = vor.u32 %v2661_v0, %v2124_v63  ;;  %v2767_v60 = vld [vmem:[#allocation7 + $0x538] sm:$0xf0]  ;;  %v2377_v61 = vor.u32 %v2724_v53, %v2376_v52  ;;  %v1930_v63 = vld [vmem:[#allocation7 + $0x64] sm:$0xf0] }
 0x158   :  { %1554 = vmatpush.bf16.msrb.mxu0 %v1929_v12  ;;  %1564 = vmatpush.bf16.msrb.mxu1 %v2237_v13  ;;  %v2460_v12 = vld [vmem:[#allocation7 + $0x470] sm:$0xf]  ;;  %v2745_v13 = vld [vmem:[#allocation7 + $0x488] sm:$0xf0] }
 0x15a   :  { %1515 = vmatpush.bf16.msra.mxu2 %v2149_v20  ;;  %1528 = vmatpush.bf16.msra.mxu3 %v2373_v21  ;;  %v2045_v20 = vor.u32 %v2637_v8, %v2042_v9  ;;  %v2461_v21 = vor.u32 %v2745_v13, %v2460_v12  ;;  %v2574_v8 = vld [vmem:[#allocation7 + $0x56c] sm:$0xf0]  ;;  %v2349_v12 = vor.u32 %v2717_v3, %v2348_v2  ;;  %v2602_v13 = vld [vmem:[#allocation7 + $0x14] sm:$0xf]  ;;  %v1992_v3 = vld [vmem:[#allocation7 + $0xc0] sm:$0xf] }
 0x15c   :  { %1555 = vmatpush.bf16.msrb.mxu0 %v1901_v28  ;;  %1565 = vmatpush.bf16.msrb.mxu1 %v2209_v29  ;;  %v2672_v28 = vld [vmem:[#allocation7 + $0x244] sm:$0xf]  ;;  %v2182_v29 = vld [vmem:[#allocation7 + $0x25c] sm:$0xf0] }
 0x15d   :  { %v2185_v36 = vor.u32 %v2672_v28, %v2182_v29  ;;  %v2753_v28 = vld [vmem:[#allocation7 + $0x4c8] sm:$0xf0] }
 0x15e   :  { %1516 = vmatpush.bf16.msra.mxu2 %v2121_v39  ;;  %1529 = vmatpush.bf16.msra.mxu3 %v2345_v40  ;;  %v2493_v39 = vor.u32 %v2749_v30, %v2490_v31  ;;  %v2404_v40 = vld [vmem:[#allocation7 + $0x400] sm:$0xf]  ;;  %v2076_v31 = vld [vmem:[#allocation7 + $0x168] sm:$0xf] }
 0x15f   :  { %1556 = vmatmul.bf16.vlgmr.msrb.gmra.mxu0 %v2995_v15  ;;  %v2405_v47 = vor.u32 %v2731_v41, %v2404_v40  ;;  %v2350_v40 = vld [vmem:[#allocation7 + $0x3ac] sm:$0xf0]  ;;  %v2468_v41 = vld [vmem:[#allocation7 + $0x478] sm:$0xf] }
 0x160   :  { %1613 = vmatpush.bf16.msra.mxu0 %v2325_v33  ;;  %1566 = vmatpush.bf16.msrb.mxu1 %v2181_v45  ;;  %v2433_v33 = vor.u32 %v2738_v27, %v2432_v26  ;;  %v2462_v45 = vld [vmem:[#allocation7 + $0x48c] sm:$0xf0]  ;;  %v1905_v26 = vor.u32 %v2602_v13, %v1902_v14  ;;  %v2620_v13 = vld [vmem:[#allocation7 + $0xa0] sm:$0xf0]  ;;  %v2188_v14 = vld [vmem:[#allocation7 + $0x248] sm:$0xf] }
 0x161   :  { %1517 = vmatmul.bf16.vlgmr.msra.gmra.mxu2 %v2997_v16  ;;  %1530 = vmatmul.bf16.vlgmr.msra.gmra.mxu3 %v3001_v37  ;;  %v2465_v51 = vor.u32 %v2742_v44, %v2462_v45  ;;  %v2496_v27 = vld [vmem:[#allocation7 + $0x4b0] sm:$0xf]  ;;  %v2774_v44 = vld [vmem:[#allocation7 + $0x570] sm:$0xf0] }
 0x162   :  { %1574 = vmatpush.bf16.msrb.mxu2 %v2545_v43  ;;  %1594 = vmatpush.bf16.msrb.mxu3 %v2573_v46  ;;  %v2154_v43 = vld [vmem:[#allocation7 + $0x224] sm:$0xf0]  ;;  %v1989_v46 = vor.u32 %v2623_v34, %v1986_v35  ;;  %v2704_v35 = vld [vmem:[#allocation7 + $0x340] sm:$0xf0] }
 0x163   :  { %v2300_v34 = vld [vmem:[#allocation7 + $0x328] sm:$0xf] }
 0x164   :  { %1614 = vmatpush.bf16.msra.mxu0 %v2297_v50  ;;  %1567 = vmatpush.bf16.msrb.mxu1 %v2153_v58  ;;  %v2157_v50 = vor.u32 %v2665_v42, %v2154_v43  ;;  %v1961_v58 = vor.u32 %v2616_v48, %v1958_v49  ;;  %v2746_v42 = vld [vmem:[#allocation7 + $0x490] sm:$0xf0]  ;;  %v2580_v43 = vld [vmem:[#allocation7 + $0x558] sm:$0xf]  ;;  %v2641_v49 = vld [vmem:[#allocation7 + $0x148] sm:$0xf0] }
 0x165   :  { %v2469_v52 = vor.u32 %v2746_v42, %v2468_v41  ;;  %v2581_v53 = vor.u32 %v2774_v44, %v2580_v43 }
 0x166   :  { %1600 = vmatpush.bf16.msra.mxu3 %v2101_v55  ;;  %1575 = vmatpush.bf16.msrb.mxu2 %v2517_v56  ;;  %v2126_v55 = vld [vmem:[#allocation7 + $0x1ec] sm:$0xf0]  ;;  %v2735_v56 = vld [vmem:[#allocation7 + $0x43c] sm:$0xf] }
 0x167   :  { %v2129_v0 = vor.u32 %v2658_v54, %v2126_v55  ;;  %v2437_v1 = vor.u32 %v2735_v56, %v2434_v57  ;;  %v2440_v54 = vld [vmem:[#allocation7 + $0x440] sm:$0xf]  ;;  %v2739_v55 = vld [vmem:[#allocation7 + $0x458] sm:$0xf0] }
 0x168   :  { %1615 = vmatpush.bf16.msra.mxu0 %v2269_v62  ;;  %1568 = vmatpush.bf16.msrb.mxu1 %v2125_v7  ;;  %v2609_v62 = vld [vmem:[#allocation7 + $0x4c] sm:$0xf]  ;;  %v2770_v7 = vld [vmem:[#allocation7 + $0x554] sm:$0xf] }
 0x169   :  { %v1933_v9 = vor.u32 %v2609_v62, %v1930_v63  ;;  %v2577_v19 = vor.u32 %v2770_v7, %v2574_v8  ;;  %v2441_v62 = vor.u32 %v2739_v55, %v2440_v54  ;;  %v2412_v63 = vld [vmem:[#allocation7 + $0x408] sm:$0xf]  ;;  %v2384_v8 = vld [vmem:[#allocation7 + $0x3d0] sm:$0xf] }
 0x16a   :  { %1601 = vmatpush.bf16.msra.mxu3 %v2073_v5  ;;  %1576 = vmatpush.bf16.msrb.mxu2 %v2489_v6  ;;  %v2553_v5 = vor.u32 %v2767_v60, %v2552_v59  ;;  %v2406_v6 = vld [vmem:[#allocation7 + $0x41c] sm:$0xf0]  ;;  %v2634_v59 = vld [vmem:[#allocation7 + $0x110] sm:$0xf0]  ;;  %v2244_v60 = vld [vmem:[#allocation7 + $0x2b8] sm:$0xf] }
 0x16b   :  { %1569 = vmatmul.bf16.vlgmr.msrb.gmra.mxu1 %v2997_v16  ;;  %v2409_v18 = vor.u32 %v2728_v4, %v2406_v6  ;;  %v2627_v4 = vld [vmem:[#allocation7 + $0xd8] sm:$0xf0] }
 0x16c   :  { %1616 = vmatpush.bf16.msra.mxu0 %v2241_v10  ;;  %1626 = vmatpush.bf16.msra.mxu1 %v2549_v11  ;;  %v2524_v10 = vld [vmem:[#allocation7 + $0x4e8] sm:$0xf]  ;;  %v2760_v11 = vld [vmem:[#allocation7 + $0x500] sm:$0xf0]  ;;  %v2683_v6 = vld [vmem:[#allocation7 + $0x298] sm:$0xf0] }
 0x16d   :  { %v2525_v23 = vor.u32 %v2760_v11, %v2524_v10  ;;  %v1993_v10 = vor.u32 %v2627_v4, %v1992_v3 }
 0x16e   :  { %1602 = vmatpush.bf16.msra.mxu3 %v2045_v20  ;;  %1577 = vmatpush.bf16.msrb.mxu2 %v2461_v21  ;;  %v2655_v20 = vld [vmem:[#allocation7 + $0x1b8] sm:$0xf0]  ;;  %v2328_v21 = vld [vmem:[#allocation7 + $0x360] sm:$0xf] }
 0x16f   :  { %v2105_v29 = vor.u32 %v2655_v20, %v2104_v17  ;;  %v2329_v30 = vor.u32 %v2711_v22, %v2328_v21  ;;  %v2676_v17 = vld [vmem:[#allocation7 + $0x260] sm:$0xf0]  ;;  %v2718_v20 = vld [vmem:[#allocation7 + $0x3b0] sm:$0xf0] }
 0x170   :  { %1617 = vmatpush.bf16.msra.mxu0 %v2213_v24  ;;  %1627 = vmatpush.bf16.msra.mxu1 %v2521_v25  ;;  %v2721_v24 = vld [vmem:[#allocation7 + $0x3cc] sm:$0xf]  ;;  %v2378_v25 = vld [vmem:[#allocation7 + $0x3e4] sm:$0xf0]  ;;  %v2189_v22 = vor.u32 %v2676_v17, %v2188_v14 }
 0x171   :  { %2586 = vmatmul.msk.bf16.vlgmr.msrb.gmra.mxu3 %vm1336_vm2, %v3003_v38 }
 0x172   :  { %1603 = vmatpush.bf16.msra.mxu3 %v2017_v32  ;;  %1578 = vmatpush.bf16.msrb.mxu2 %v2433_v33  ;;  %v2381_v32 = vor.u32 %v2721_v24, %v2378_v25  ;;  %v2648_v33 = vld [vmem:[#allocation7 + $0x180] sm:$0xf0]  ;;  %v2613_v24 = vld [vmem:[#allocation7 + $0x68] sm:$0xf0]  ;;  %v2160_v25 = vld [vmem:[#allocation7 + $0x210] sm:$0xf] }
 0x173   :  { %v2077_v45 = vor.u32 %v2648_v33, %v2076_v31  ;;  %v2606_v31 = vld [vmem:[#allocation7 + $0x30] sm:$0xf0] }
 0x174   :  { %1618 = vmatpush.bf16.msra.mxu0 %v2185_v36  ;;  %1628 = vmatpush.bf16.msra.mxu1 %v2493_v39  ;;  %v2497_v36 = vor.u32 %v2753_v28, %v2496_v27  ;;  %v2714_v39 = vld [vmem:[#allocation7 + $0x394] sm:$0xf] }
 0x175   :  { %v2353_v48 = vor.u32 %v2714_v39, %v2350_v40  ;;  %v2662_v33 = vld [vmem:[#allocation7 + $0x1f0] sm:$0xf0] }
 0x176   :  { %1604 = vmatpush.bf16.msra.mxu3 %v1989_v46  ;;  %1579 = vmatpush.bf16.msrb.mxu2 %v2405_v47  ;;  %v2301_v46 = vor.u32 %v2704_v35, %v2300_v34  ;;  %v2048_v47 = vld [vmem:[#allocation7 + $0x130] sm:$0xf] }
 0x177   :  { %v2049_v56 = vor.u32 %v2641_v49, %v2048_v47  ;;  %v3039_v40 = vld [vmem:[%s3059_s6] sm:$0xff]  ;;  %s2929_s6 = smov [#allocation8]  }
 0x178   :  { %1619 = vmatpush.bf16.msra.mxu0 %v2157_v50  ;;  %1629 = vmatpush.bf16.msra.mxu1 %v2465_v51  ;;  %v2272_v50 = vld [vmem:[#allocation7 + $0x2f0] sm:$0xf]  ;;  %v2697_v51 = vld [vmem:[#allocation7 + $0x308] sm:$0xf0]  ;;  %v422_v41 = vperm.slane %v3039_v40, 0  ;;  %s1849_s24 = sshll.u32 %s2929_s6, 4  ;;  %s1850_s24 = int_to_ptr.vmem [resolvable:$true] %s1849_s24 }
 0x179   :  { %v2273_v57 = vor.u32 %v2697_v51, %v2272_v50 }
 0x17a   :  { %1605 = vmatpush.bf16.msra.mxu3 %v1961_v58  ;;  %1580 = vmatpush.bf16.msrb.mxu2 %v2377_v61  ;;  %v2020_v58 = vld [vmem:[#allocation7 + $0xf8] sm:$0xf]  ;;  %v2690_v61 = vld [vmem:[#allocation7 + $0x2d0] sm:$0xf0] }
 0x17b   :  { %v2245_v2 = vor.u32 %v2690_v61, %v2244_v60 }
 0x17c   :  { %1620 = vmatpush.bf16.msra.mxu0 %v2129_v0  ;;  %1630 = vmatpush.bf16.msra.mxu1 %v2437_v1  ;;  %v2732_v0 = vld [vmem:[#allocation7 + $0x420] sm:$0xf0]  ;;  %v2021_v1 = vor.u32 %v2634_v59, %v2020_v58 }
 0x17d   :  { %v2413_v7 = vor.u32 %v2732_v0, %v2412_v63 }
 0x17e   :  { %1606 = vmatpush.bf16.msra.mxu3 %v1933_v9  ;;  %1581 = vmatpush.bf16.msrb.mxu2 %v2349_v12  ;;  %v2725_v9 = vld [vmem:[#allocation7 + $0x3e8] sm:$0xf0]  ;;  %v1964_v12 = vld [vmem:[#allocation7 + $0x88] sm:$0xf] }
 0x17f   :  { %1621 = vmatmul.bf16.vlgmr.msra.gmra.mxu0 %v2997_v16  ;;  %v1965_v21 = vor.u32 %v2620_v13, %v1964_v12  ;;  %v424_v12 = vperm.slane %v3039_v40, 2 }
 0x180   :  { %1678 = vmatpush.bf16.msrb.mxu0 %v2553_v5  ;;  %1631 = vmatpush.bf16.msra.mxu1 %v2409_v18  ;;  %v2216_v5 = vld [vmem:[#allocation7 + $0x280] sm:$0xf]  ;;  %v2385_v18 = vor.u32 %v2725_v9, %v2384_v8 }
 0x181   :  { %1582 = vmatmul.bf16.vlgmr.msrb.gmra.mxu2 %v3001_v37  ;;  %v2217_v11 = vor.u32 %v2683_v6, %v2216_v5 }
 0x182   :  { %1646 = vmatpush.bf16.msra.mxu2 %v2577_v19  ;;  %1607 = vmatpush.bf16.msra.mxu3 %v1905_v26  ;;  %v2356_v19 = vld [vmem:[#allocation7 + $0x398] sm:$0xf]  ;;  %v2669_v26 = vld [vmem:[#allocation7 + $0x228] sm:$0xf0] }
 0x183   :  { %v2357_v27 = vor.u32 %v2718_v20, %v2356_v19 }
 0x184   :  { %1679 = vmatpush.bf16.msrb.mxu0 %v2525_v23  ;;  %1632 = vmatpush.bf16.msra.mxu1 %v2381_v32  ;;  %v1936_v23 = vld [vmem:[#allocation7 + $0x50] sm:$0xf]  ;;  %v2132_v32 = vld [vmem:[#allocation7 + $0x1d8] sm:$0xf] }
 0x185   :  { %1608 = vmatmul.bf16.vlgmr.msra.gmra.mxu3 %v2995_v15  ;;  %v1937_v28 = vor.u32 %v2613_v24, %v1936_v23  ;;  %v2133_v35 = vor.u32 %v2662_v33, %v2132_v32 }
 0x186   :  { %1652 = vmatpush.bf16.msrb.mxu2 %v2105_v29  ;;  %1665 = vmatpush.bf16.msrb.mxu3 %v2329_v30  ;;  %v2161_v29 = vor.u32 %v2669_v26, %v2160_v25  ;;  %v1908_v30 = vld [vmem:[#allocation7 + $0x18] sm:$0xf] }
 0x187   :  { %v1909_v34 = vor.u32 %v2606_v31, %v1908_v30 }
 0x188   :  { %1680 = vmatpush.bf16.msrb.mxu0 %v2497_v36  ;;  %1633 = vmatpush.bf16.msra.mxu1 %v2353_v48 }
 0x18a   :  { %1653 = vmatpush.bf16.msrb.mxu2 %v2077_v45  ;;  %1666 = vmatpush.bf16.msrb.mxu3 %v2301_v46 }
 0x18b   :  { %1634 = vmatmul.bf16.vlgmr.msra.gmra.mxu1 %v3001_v37 }
 0x18c   :  { %1681 = vmatpush.bf16.msrb.mxu0 %v2469_v52  ;;  %1698 = vmatpush.bf16.msrb.mxu1 %v2581_v53 }
 0x18e   :  { %1654 = vmatpush.bf16.msrb.mxu2 %v2049_v56  ;;  %1667 = vmatpush.bf16.msrb.mxu3 %v2273_v57 }
 0x190   :  { %1682 = vmatpush.bf16.msrb.mxu0 %v2441_v62 }
 0x191   :  { %2587 = vmatmul.msk.bf16.vlgmr.msra.gmra.mxu2 %vm1336_vm2, %v3003_v38 }
 0x192   :  { %1655 = vmatpush.bf16.msrb.mxu2 %v2021_v1  ;;  %1668 = vmatpush.bf16.msrb.mxu3 %v2245_v2 }
 0x194   :  { %1683 = vmatpush.bf16.msrb.mxu0 %v2413_v7 }
 0x196   :  { %1656 = vmatpush.bf16.msrb.mxu2 %v1993_v10  ;;  %1669 = vmatpush.bf16.msrb.mxu3 %v2217_v11 }
 0x197   :  { %v1349_v36 = vpop.f32.mrf.mxu0  ;;  %v1362_v39 = vpop.f32.mrf.mxu1 }
 0x198   :  { %1684 = vmatpush.bf16.msrb.mxu0 %v2385_v18  ;;  %v1350_v42 = vadd.f32 %v1349_v36, %v422_v41 }
 0x19a   :  { %1657 = vmatpush.bf16.msrb.mxu2 %v1965_v21  ;;  %1670 = vmatpush.bf16.msrb.mxu3 %v2189_v22  ;;  %v1363_v44 = vadd.f32 %v1362_v39, %v1350_v42 }
 0x19b   :  { %2588 = vmatmul.msk.bf16.vlgmr.msrb.gmra.mxu1 %vm1336_vm2, %v3003_v38 }
 0x19c   :  { %1685 = vmatpush.bf16.msrb.mxu0 %v2357_v27 }
 0x19e   :  { %1658 = vmatpush.bf16.msrb.mxu2 %v1937_v28  ;;  %1671 = vmatpush.bf16.msrb.mxu3 %v2161_v29 }
 0x19f   :  { %1686 = vmatmul.bf16.vlgmr.msrb.gmra.mxu0 %v3001_v37  ;;  %v1351_v37 = vpop.f32.mrf.mxu0  ;;  %v1364_v43 = vpop.f32.mrf.mxu1 }
 0x1a2   :  { %1659 = vmatpush.bf16.msrb.mxu2 %v1909_v34  ;;  %1672 = vmatpush.bf16.msrb.mxu3 %v2133_v35 }
 0x1a4   :  { %v1375_v38 = vpop.f32.mrf.mxu2  ;;  %v1388_v45 = vpop.f32.mrf.mxu3 }
 0x1a5   :  { %1660 = vmatmul.bf16.vlgmr.msrb.gmra.mxu2 %v2995_v15  ;;  %1673 = vmatmul.bf16.vlgmr.msrb.gmra.mxu3 %v2997_v16  ;;  %v1376_v46 = vadd.f32 %v1375_v38, %v1363_v44  ;;  %v423_v15 = vperm.slane %v3039_v40, 1 }
 0x1a7   :  { %v1389_v47 = vadd.f32 %v1388_v45, %v1376_v46 }
 0x1a8   :  { %v1414_v48 = vpop.f32.mrf.mxu0  ;;  %v1427_v49 = vpop.f32.mrf.mxu1 }
 0x1a9   :  { %v2589_v50 = vmul.f32 -1.442695, %v1389_v47  ;;  %v425_v47 = vperm.slane %v3039_v40, 3 }
 0x1ab   :  { %2790 = vpow2.f32 %v2589_v50 }
 0x1ac   :  { %v1377_v51 = vpop.f32.mrf.mxu2  ;;  %v1390_v52 = vpop.f32.mrf.mxu3 }
 0x1b0   :  { %v1416_v53 = vpop.f32.mrf.mxu0  ;;  %v1429_v54 = vpop.f32.mrf.mxu1 }
 0x1b1   :  { %v2791_v55 = vpop.eup %2790 }
 0x1b2   :  { %v1725_v16 = vadd.f32 1.0, %v2791_v55 }
 0x1b4   :  { %2792 = vrcp.f32 %v1725_v16  ;;  %v1401_v56 = vpop.f32.mrf.mxu3  ;;  %v1440_v57 = vpop.f32.mrf.mxu2  ;;  %v1743_v6 = vand.u32 2147483648, %v1725_v16  ;;  %v1741_v8 = vand.u32 2147483647, %v1725_v16  ;;  %vm1737_vm4 = vweird.f32 %v1725_v16 }
 0x1b5   :  { %v1402_v58 = vadd.f32 %v1401_v56, %v423_v15 }
 0x1b6   :  { %v1744_v13 = vor.u32 1.1754944e-38, %v1743_v6  ;;  %vm1742_vm6 = vcmp.eq.f32.partialorder %v1741_v8, 8.507059e+37  ;;  %v426_v8 = vperm.slane %v3039_v40, 4 }
 0x1b7   :  { %v1415_v59 = vadd.f32 %v1414_v48, %v1402_v58 }
 0x1b8   :  { %v1479_v60 = vpop.f32.mrf.mxu0  ;;  %v1492_v61 = vpop.f32.mrf.mxu1 }
 0x1b9   :  { %v1428_v62 = vadd.f32 %v1427_v49, %v1415_v59 }
 0x1ba   :  { %v2793_v63 = vpop.eup %2792 }
 0x1bb   :  { %v1733_v0 = vmul.f32 %v2793_v63, %v1725_v16  ;;  %v1441_v1 = vadd.f32 %v1440_v57, %v1428_v62  ;;  %vm1738_vm3 = vweird.f32 %v2793_v63 }
 0x1bc   :  { %v1403_v2 = vpop.f32.mrf.mxu3  ;;  %v1442_v3 = vpop.f32.mrf.mxu2  ;;  %vm1739_vm5 = vmor %vm1737_vm4, %vm1738_vm3 }
 0x1bd   :  { %v1734_v4 = vsub.f32 1.0, %v1733_v0  ;;  %v2590_v5 = vmul.f32 -1.442695, %v1441_v1 }
 0x1bf   :  { %v1735_v7 = vmul.f32 %v2793_v63, %v1734_v4  ;;  %2794 = vpow2.f32 %v2590_v5 }
 0x1c0   :  { %v1481_v9 = vpop.f32.mrf.mxu0  ;;  %v1494_v10 = vpop.f32.mrf.mxu1 }
 0x1c1   :  { %v1736_v11 = vadd.f32 %v2793_v63, %v1735_v7 }
 0x1c3   :  { %v1740_v14 = vsel %vm1739_vm5, %v2793_v63, %v1736_v11 }
 0x1c4   :  { %v1745_v17 = vsel %vm1742_vm6, %v1744_v13, %v1740_v14  ;;  %v1453_v18 = vpop.f32.mrf.mxu2  ;;  %v1466_v19 = vpop.f32.mrf.mxu3 }
 0x1c5   :  { %v2795_v20 = vpop.eup %2794  ;;  %1837 = vst [vmem:[#allocation8] sm:$0xff] %v1745_v17  ;;  %v1454_v21 = vadd.f32 %v1453_v18, %v424_v12 }
 0x1c6   :  { %v1726_v22 = vadd.f32 1.0, %v2795_v20 }
 0x1c7   :  { %v1467_v23 = vadd.f32 %v1466_v19, %v1454_v21 }
 0x1c8   :  { %2796 = vrcp.f32 %v1726_v22  ;;  %v1505_v25 = vpop.f32.mrf.mxu1  ;;  %v1544_v26 = vpop.f32.mrf.mxu0  ;;  %v1758_v36 = vand.u32 2147483648, %v1726_v22  ;;  %v1756_v41 = vand.u32 2147483647, %v1726_v22  ;;  %vm1752_vm8 = vweird.f32 %v1726_v22 }
 0x1c9   :  { %v1480_v24 = vadd.f32 %v1479_v60, %v1467_v23  ;;  %v1506_v50 = vadd.f32 %v1505_v25, %v425_v47 }
 0x1ca   :  { %v1759_v43 = vor.u32 1.1754944e-38, %v1758_v36  ;;  %vm1757_vm10 = vcmp.eq.f32.partialorder %v1756_v41, 8.507059e+37 }
 0x1cb   :  { %v1493_v27 = vadd.f32 %v1492_v61, %v1480_v24 }
 0x1cc   :  { %v1455_v28 = vpop.f32.mrf.mxu2  ;;  %v1468_v29 = vpop.f32.mrf.mxu3 }
 0x1cd   :  { %v2591_v30 = vmul.f32 -1.442695, %v1493_v27  ;;  %v427_v27 = vperm.slane %v3039_v40, 5 }
 0x1ce   :  { %v2797_v31 = vpop.eup %2796 }
 0x1cf   :  { %v1748_v32 = vmul.f32 %v2797_v31, %v1726_v22  ;;  %2798 = vpow2.f32 %v2591_v30  ;;  %vm1753_vm7 = vweird.f32 %v2797_v31 }
 0x1d0   :  { %v1507_v34 = vpop.f32.mrf.mxu1  ;;  %v1546_v35 = vpop.f32.mrf.mxu0  ;;  %vm1754_vm9 = vmor %vm1752_vm8, %vm1753_vm7 }
 0x1d1   :  { %v1749_v33 = vsub.f32 1.0, %v1748_v32 }
 0x1d3   :  { %v1750_v39 = vmul.f32 %v2797_v31, %v1749_v33 }
 0x1d5   :  { %v2799_v42 = vpop.eup %2798  ;;  %v1751_v37 = vadd.f32 %v2797_v31, %v1750_v39 }
 0x1d6   :  { %v1727_v44 = vadd.f32 1.0, %v2799_v42 }
 0x1d7   :  { %v1755_v38 = vsel %vm1754_vm9, %v2797_v31, %v1751_v37 }
 0x1d8   :  { %v1760_v45 = vsel %vm1757_vm10, %v1759_v43, %v1755_v38  ;;  %2800 = vrcp.f32 %v1727_v44  ;;  %v1773_v54 = vand.u32 2147483648, %v1727_v44  ;;  %v1771_v56 = vand.u32 2147483647, %v1727_v44 }
 0x1d9   :  { %1838 = vst [vmem:[#allocation8 + $0x8] sm:$0xff] %v1760_v45  ;;  %vm1767_vm12 = vweird.f32 %v1727_v44 }
 0x1da   :  { %v1774_v60 = vor.u32 1.1754944e-38, %v1773_v54  ;;  %vm1772_vm14 = vcmp.eq.f32.partialorder %v1771_v56, 8.507059e+37  ;;  %v428_v56 = vperm.slane %v3039_v40, 6 }
 0x1dc   :  { %v1557_v46 = vpop.f32.mrf.mxu0 }
 0x1dd   :  { %v1558_v12 = vadd.f32 %v1557_v46, %v426_v8 }
 0x1de   :  { %v2801_v48 = vpop.eup %2800 }
 0x1df   :  { %v1763_v49 = vmul.f32 %v2801_v48, %v1727_v44  ;;  %vm1768_vm11 = vweird.f32 %v2801_v48 }
 0x1e0   :  { %vm1769_vm13 = vmor %vm1767_vm12, %vm1768_vm11 }
 0x1e1   :  { %v1764_v51 = vsub.f32 1.0, %v1763_v49 }
 0x1e3   :  { %v1765_v16 = vmul.f32 %v2801_v48, %v1764_v51 }
 0x1e4   :  { %v1518_v52 = vpop.f32.mrf.mxu2  ;;  %v1559_v53 = vpop.f32.mrf.mxu0 }
 0x1e5   :  { %v1519_v55 = vadd.f32 %v1518_v52, %v1506_v50  ;;  %v1531_v15 = vpop.f32.mrf.mxu3  ;;  %v1766_v58 = vadd.f32 %v2801_v48, %v1765_v16 }
 0x1e7   :  { %v1532_v57 = vadd.f32 %v1531_v15, %v1519_v55  ;;  %v1770_v62 = vsel %vm1769_vm13, %v2801_v48, %v1766_v58 }
 0x1e8   :  { %v1570_v59 = vpop.f32.mrf.mxu1  ;;  %v1775_v63 = vsel %vm1772_vm14, %v1774_v60, %v1770_v62 }
 0x1e9   :  { %v1545_v61 = vadd.f32 %v1544_v26, %v1532_v57  ;;  %1839 = vst [vmem:[#allocation8 + $0x10] sm:$0xff] %v1775_v63  ;;  %v1571_v19 = vadd.f32 %v1570_v59, %v1558_v12 }
 0x1eb   :  { %v2592_v0 = vmul.f32 -1.442695, %v1545_v61 }
 0x1ec   :  { %v1520_v1 = vpop.f32.mrf.mxu2 }
 0x1ed   :  { %2802 = vpow2.f32 %v2592_v0  ;;  %v1533_v2 = vpop.f32.mrf.mxu3 }
 0x1f0   :  { %v1572_v3 = vpop.f32.mrf.mxu1 }
 0x1f3   :  { %v2803_v4 = vpop.eup %2802 }
 0x1f4   :  { %v1728_v5 = vadd.f32 1.0, %v2803_v4 }
 0x1f5   :  { %v1596_v6 = vpop.f32.mrf.mxu3 }
 0x1f6   :  { %2804 = vrcp.f32 %v1728_v5  ;;  %v1788_v14 = vand.u32 2147483648, %v1728_v5  ;;  %v1786_v18 = vand.u32 2147483647, %v1728_v5  ;;  %vm1782_vm0 = vweird.f32 %v1728_v5 }
 0x1f8   :  { %v1789_v24 = vor.u32 1.1754944e-38, %v1788_v14  ;;  %vm1787_vm2 = vcmp.eq.f32.partialorder %v1786_v18, 8.507059e+37 }
 0x1fc   :  { %v1622_v7 = vpop.f32.mrf.mxu0  ;;  %v2805_v9 = vpop.eup %2804 }
 0x1fd   :  { %v1778_v10 = vmul.f32 %v2805_v9, %v1728_v5  ;;  %v1598_v11 = vpop.f32.mrf.mxu3  ;;  %vm1783_vm15 = vweird.f32 %v2805_v9 }
 0x1fe   :  { %vm1784_vm1 = vmor %vm1782_vm0, %vm1783_vm15 }
 0x1ff   :  { %v1779_v13 = vsub.f32 1.0, %v1778_v10 }
 0x201   :  { %v1780_v17 = vmul.f32 %v2805_v9, %v1779_v13 }
 0x203   :  { %v1781_v22 = vadd.f32 %v2805_v9, %v1780_v17 }
 0x204   :  { %v1624_v20 = vpop.f32.mrf.mxu0  ;;  %v1583_v21 = vpop.f32.mrf.mxu2 }
 0x205   :  { %v1584_v23 = vadd.f32 %v1583_v21, %v1571_v19  ;;  %v1785_v25 = vsel %vm1784_vm1, %v2805_v9, %v1781_v22 }
 0x206   :  { %v1790_v29 = vsel %vm1787_vm2, %v1789_v24, %v1785_v25 }
 0x207   :  { %v1597_v26 = vadd.f32 %v1596_v6, %v1584_v23  ;;  %1840 = vst [vmem:[#allocation8 + $0x18] sm:$0xff] %v1790_v29 }
 0x208   :  { %v1609_v28 = vpop.f32.mrf.mxu3  ;;  %v1635_v30 = vpop.f32.mrf.mxu1 }
 0x209   :  { %v2593_v31 = vmul.f32 -1.442695, %v1597_v26  ;;  %v1610_v32 = vadd.f32 %v1609_v28, %v427_v27 }
 0x20b   :  { %2806 = vpow2.f32 %v2593_v31  ;;  %v1623_v34 = vadd.f32 %v1622_v7, %v1610_v32 }
 0x20c   :  { %v1585_v33 = vpop.f32.mrf.mxu2 }
 0x20d   :  { %v1636_v42 = vadd.f32 %v1635_v30, %v1623_v34 }
 0x210   :  { %v1611_v35 = vpop.f32.mrf.mxu3  ;;  %v1637_v36 = vpop.f32.mrf.mxu1 }
 0x211   :  { %v2807_v39 = vpop.eup %2806 }
 0x212   :  { %v1729_v41 = vadd.f32 1.0, %v2807_v39 }
 0x214   :  { %2808 = vrcp.f32 %v1729_v41  ;;  %v1648_v37 = vpop.f32.mrf.mxu2  ;;  %v1803_v50 = vand.u32 2147483648, %v1729_v41  ;;  %v1801_v53 = vand.u32 2147483647, %v1729_v41  ;;  %vm1797_vm4 = vweird.f32 %v1729_v41 }
 0x215   :  { %v1649_v43 = vadd.f32 %v1648_v37, %v1636_v42 }
 0x216   :  { %v1804_v57 = vor.u32 1.1754944e-38, %v1803_v50  ;;  %vm1802_vm6 = vcmp.eq.f32.partialorder %v1801_v53, 8.507059e+37 }
 0x217   :  { %v2594_v44 = vmul.f32 -1.442695, %v1649_v43 }
 0x218   :  { %v1700_v45 = vpop.f32.mrf.mxu1 }
 0x219   :  { %2810 = vpow2.f32 %v2594_v44 }
 0x21a   :  { %v2809_v46 = vpop.eup %2808 }
 0x21b   :  { %v1793_v47 = vmul.f32 %v2809_v46, %v1729_v41  ;;  %vm1798_vm3 = vweird.f32 %v2809_v46 }
 0x21c   :  { %v1687_v38 = vpop.f32.mrf.mxu0  ;;  %v1650_v48 = vpop.f32.mrf.mxu2  ;;  %vm1799_vm5 = vmor %vm1797_vm4, %vm1798_vm3 }
 0x21d   :  { %v1794_v49 = vsub.f32 1.0, %v1793_v47 }
 0x21f   :  { %v2811_v51 = vpop.eup %2810  ;;  %v1795_v52 = vmul.f32 %v2809_v46, %v1794_v49 }
 0x220   :  { %v1730_v54 = vadd.f32 1.0, %v2811_v51  ;;  %v1702_v15 = vpop.f32.mrf.mxu1 }
 0x221   :  { %v1796_v16 = vadd.f32 %v2809_v46, %v1795_v52 }
 0x222   :  { %2812 = vrcp.f32 %v1730_v54  ;;  %v1818_v5 = vand.u32 2147483648, %v1730_v54  ;;  %v1816_v8 = vand.u32 2147483647, %v1730_v54  ;;  %vm1812_vm8 = vweird.f32 %v1730_v54 }
 0x223   :  { %v1800_v58 = vsel %vm1799_vm5, %v2809_v46, %v1796_v16 }
 0x224   :  { %v1689_v55 = vpop.f32.mrf.mxu0  ;;  %v1805_v59 = vsel %vm1802_vm6, %v1804_v57, %v1800_v58  ;;  %v1819_v11 = vor.u32 1.1754944e-38, %v1818_v5  ;;  %vm1817_vm10 = vcmp.eq.f32.partialorder %v1816_v8, 8.507059e+37 }
 0x225   :  { %1841 = vst [vmem:[#allocation8 + $0x20] sm:$0xff] %v1805_v59 }
 0x228   :  { %v1661_v60 = vpop.f32.mrf.mxu2  ;;  %v1674_v61 = vpop.f32.mrf.mxu3 }
 0x229   :  { %v1662_v62 = vadd.f32 %v1661_v60, %v428_v56  ;;  %v2813_v0 = vpop.eup %2812 }
 0x22a   :  { %v1808_v1 = vmul.f32 %v2813_v0, %v1730_v54  ;;  %vm1813_vm7 = vweird.f32 %v2813_v0 }
 0x22b   :  { %v1675_v63 = vadd.f32 %v1674_v61, %v1662_v62  ;;  %vm1814_vm9 = vmor %vm1812_vm8, %vm1813_vm7 }
 0x22c   :  { %v1809_v3 = vsub.f32 1.0, %v1808_v1 }
 0x22d   :  { %v1688_v2 = vadd.f32 %v1687_v38, %v1675_v63 }
 0x22e   :  { %v1810_v40 = vmul.f32 %v2813_v0, %v1809_v3 }
 0x22f   :  { %v1701_v4 = vadd.f32 %v1700_v45, %v1688_v2 }
 0x230   :  { %v1663_v6 = vpop.f32.mrf.mxu2  ;;  %v1676_v7 = vpop.f32.mrf.mxu3  ;;  %v1811_v10 = vadd.f32 %v2813_v0, %v1810_v40 }
 0x231   :  { %v2595_v9 = vmul.f32 -1.442695, %v1701_v4 }
 0x232   :  { %v1815_v12 = vsel %vm1814_vm9, %v2813_v0, %v1811_v10 }
 0x233   :  { %2814 = vpow2.f32 %v2595_v9  ;;  %v1820_v13 = vsel %vm1817_vm10, %v1819_v11, %v1815_v12 }
 0x234   :  { %1842 = vst [vmem:[#allocation8 + $0x28] sm:$0xff] %v1820_v13 }
 0x239   :  { %v2815_v14 = vpop.eup %2814 }
 0x23a   :  { %v1731_v17 = vadd.f32 1.0, %v2815_v14 }
 0x23c   :  { %2816 = vrcp.f32 %v1731_v17  ;;  %v1833_v21 = vand.u32 2147483648, %v1731_v17  ;;  %v1831_v23 = vand.u32 2147483647, %v1731_v17  ;;  %vm1827_vm12 = vweird.f32 %v1731_v17 }
 0x23e   :  { %v1834_v25 = vor.u32 1.1754944e-38, %v1833_v21  ;;  %vm1832_vm14 = vcmp.eq.f32.partialorder %v1831_v23, 8.507059e+37 }
 0x242   :  { %v2817_v18 = vpop.eup %2816 }
 0x243   :  { %v1823_v19 = vmul.f32 %v2817_v18, %v1731_v17  ;;  %vm1828_vm11 = vweird.f32 %v2817_v18 }
 0x244   :  { %vm1829_vm13 = vmor %vm1827_vm12, %vm1828_vm11 }
 0x245   :  { %v1824_v20 = vsub.f32 1.0, %v1823_v19 }
 0x247   :  { %v1825_v22 = vmul.f32 %v2817_v18, %v1824_v20 }
 0x249   :  { %v1826_v24 = vadd.f32 %v2817_v18, %v1825_v22 }
 0x24b   :  { %v1830_v26 = vsel %vm1829_vm13, %v2817_v18, %v1826_v24 }
 0x24c   :  { %v1835_v27 = vsel %vm1832_vm14, %v1834_v25, %v1830_v26 }
 0x24d   :  { %1843 = vst [vmem:[#allocation8 + $0x30] sm:$0xff] %v1835_v27 }
 0x24e   :  { %1854 = dma.vmem_to_hbm [thread:$0]  %s1850_s24, 896, %s1852_s27, [#allocation4]  }
 0x24f   :  { %2918 = dma.done.wait [#allocation4], 896  }
 0x250   :  { %2919 = vsyncadd [#allocation4], 4294966400 }
 0x251   :  { %1859 = vsyncpa [#allocation3], 1 }
 0x252   :  { %1860 = vsyncpa [#allocation6], 1 }
 0x253   :  { %1861 = vsyncpa [#allocation4], 1 }

</bundles_post_ra>
